<compile_context>
chip_gen: v7x
topology: tpu7x:2x2x1
jax: 0.10.0
libtpu: 0.0.40
codegen_flags: <defaults>
</compile_context>

<pallas_src>
import numpy as np
import jax
import jax.numpy as jnp
from jax.experimental import pallas as pl
from jax.experimental.pallas import tpu as pltpu


# ----------------------------- Pallas kernel ------------------------------ #

def tree_lstm_level_kernel(count_ref, left_ref, right_ref,    # scalar prefetch (SMEM)
                           xp_ref, w_ref,                      # VMEM inputs
                           state_ref,                          # VMEM output (resident): [h | c]
                           gath_buf, lcrc_buf):                # VMEM scratch
    d = pl.program_id(0)                       # current tree level (0 = leaves)
    L_max, two_h = gath_buf.shape
    H = two_h // 2
    base = d * L_max                           # level-major row offset of this level
    count = count_ref[d]                       # number of real nodes at this level

    @pl.when(d == 0)
    def _leaf_children():
        # Leaves: both child states are zero (matches the PyTorch zero Variables).
        gath_buf[...] = jnp.zeros_like(gath_buf)
        lcrc_buf[...] = jnp.zeros_like(lcrc_buf)

    @pl.when(d > 0)
    def _gather_children():
        # Children of level-d nodes live at levels < d, so their packed [h | c] rows are
        # already resident in the output ref.  One (1, 2H) dynamic read per child.
        for j in range(L_max):
            @pl.when(j < count)
            def _(j=j):
                li = left_ref[base + j]
                ri = right_ref[base + j]
                lrow = state_ref[pl.ds(li, 1), :]            # (1, 2H) = [lh | lc]
                rrow = state_ref[pl.ds(ri, 1), :]            # (1, 2H) = [rh | rc]
                gath_buf[pl.ds(j, 1), 0:H] = lrow[:, 0:H]
                gath_buf[pl.ds(j, 1), H:two_h] = rrow[:, 0:H]
                lcrc_buf[pl.ds(j, 1), :] = lrow[:, H:two_h] + rrow[:, H:two_h]

    # One bf16 MXU matmul per level (K = 2H), f32 accumulation; xp already holds
    # x @ Wx + b (precomputed on the host), so g = xp + [lh | rh] @ [Wl; Wr].
    g = xp_ref[...] + jnp.dot(gath_buf[...].astype(jnp.bfloat16), w_ref[...],
                              preferred_element_type=jnp.float32)

    i_g = jax.nn.sigmoid(g[:, 0 * H:1 * H])
    f_g = jax.nn.sigmoid(g[:, 1 * H:2 * H])
    o_g = jax.nn.sigmoid(g[:, 2 * H:3 * H])
    u_g = jnp.tanh(g[:, 3 * H:4 * H])

    # c = i*u + f*(lc + rc)  ==  i*u + f*lc + f*rc  (module semantics)
    c_lvl = i_g * u_g + f_g * lcrc_buf[...]
    h_lvl = o_g * jnp.tanh(c_lvl)

    # Contiguous level-major block store (junk in padding rows lands in padding rows).
    row0 = pl.multiple_of(base, 8)
    state_ref[pl.ds(row0, L_max), 0:H] = h_lvl
    state_ref[pl.ds(row0, L_max), H:two_h] = c_lvl


def tree_lstm_pallas(level_count, left_rows, right_rows, xp_sched, W_rec, postorder_rows):
    """Level-wavefront BinaryTreeLSTM forward.

    Returns (outputs_postorder (N, H), (c_root (1, H), h_root (1, H)))."""
    D = int(level_count.shape[0])
    four_h = xp_sched.shape[1]
    H = four_h // 4
    two_h = 2 * H
    L_max = xp_sched.shape[0] // D
    N_state = D * L_max

    assert H % 128 == 0, "hidden_size must be a multiple of 128 (lane-aligned gate slices)"
    assert L_max % 8 == 0
    assert W_rec.shape == (two_h, four_h)

    # Precise VMEM accounting (inputs double-buffered, output + scratch single).
    bytes_state = N_state * two_h * 4
    bytes_w = two_h * four_h * 2                       # bf16 weights
    bytes_xp = L_max * four_h * 4
    bytes_scr = L_max * two_h * 4 + L_max * H * 4
    est = bytes_state + 2 * bytes_w + 2 * bytes_xp + bytes_scr
    vmem_limit = int(min(est + (4 << 20), 48 << 20))   # headroom, 48 MiB cap for v7x

    grid_spec = pltpu.PrefetchScalarGridSpec(
        num_scalar_prefetch=3,                          # level_count, left, right -> SMEM
        grid=(D,),
        in_specs=[
            pl.BlockSpec((L_max, four_h), lambda d, *_: (d, 0)),   # xp level tile (f32)
            pl.BlockSpec((two_h, four_h), lambda d, *_: (0, 0)),   # [Wl; Wr] bf16, resident
        ],
        out_specs=pl.BlockSpec((N_state, two_h), lambda d, *_: (0, 0)),  # [h | c], resident
        scratch_shapes=[
            pltpu.VMEM((L_max, two_h), jnp.float32),    # gathered [left_h | right_h]
            pltpu.VMEM((L_max, H), jnp.float32),        # lc + rc
        ],
    )

    state_all = pl.pallas_call(
        tree_lstm_level_kernel,
        out_shape=jax.ShapeDtypeStruct((N_state, two_h), jnp.float32),
        grid_spec=grid_spec,
        compiler_params=pltpu.CompilerParams(
            dimension_semantics=("arbitrary",),         # levels carry state
            vmem_limit_bytes=vmem_limit),
    )(level_count, left_rows, right_rows, xp_sched, W_rec)

    rows = jnp.asarray(postorder_rows)
    per_node = jnp.take(state_all, rows, axis=0)        # post-order [h | c]
    outputs = per_node[:, 0:H]                          # per-node h, post-order
    c_root = per_node[-1:, H:two_h]
    h_root = per_node[-1:, 0:H]
    return outputs, (c_root, h_root)


# ------------------------------ Host-side glue ---------------------------- #
# TODO(synk): the recursive tree walk / linearization, the embedding gather and the
# xp = x @ Wx + b precompute are inherently data-dependent host-side preprocessing.

class Node:
    def __init__(self, idx=None, children=()):
        self.idx = idx
        self.children = list(children)


def build_balanced(lo, hi):
    if hi - lo == 1:
        return Node(idx=lo)
    mid = (lo + hi) // 2
    return Node(idx=None, children=[build_balanced(lo, mid), build_balanced(mid, hi)])


def linearize(root):
    """Post-order records: (input_idx or -1, left_post or -1, right_post or -1, level)."""
    records = []

    def rec(node):
        if node.children:
            assert len(node.children) == 2
            lp, ll = rec(node.children[0])
            rp, rl = rec(node.children[1])
            lvl = 1 + max(ll, rl)
        else:
            lp = rp = -1
            lvl = 0
        post = len(records)
        records.append((node.idx if node.idx is not None else -1, lp, rp, lvl))
        return post, lvl

    rec(root)
    return records


def round_up(x, m):
    return (x + m - 1) // m * m


def build_level_schedule(records):
    """Level-major wavefront schedule; children are referenced by level-major row."""
    D = max(r[3] for r in records) + 1
    per_level = [[] for _ in range(D)]
    for post, r in enumerate(records):
        per_level[r[3]].append(post)
    L_max = round_up(max(len(lv) for lv in per_level), 8)

    count = np.zeros((D,), np.int32)
    left = np.zeros((D * L_max,), np.int32)
    right = np.zeros((D * L_max,), np.int32)
    row_of_post = np.zeros((len(records),), np.int32)    # post-order -> level-major row

    for d, lv in enumerate(per_level):
        count[d] = len(lv)
        for j, post in enumerate(lv):
            row_of_post[post] = d * L_max + j
    for d, lv in enumerate(per_level):
        for j, post in enumerate(lv):
            k = d * L_max + j
            _, lp, rp, _ = records[post]
            left[k] = row_of_post[lp] if lp >= 0 else 0   # leaves never read children
            right[k] = row_of_post[rp] if rp >= 0 else 0
    return D, L_max, count, left, right, row_of_post


def init_linear(key, in_dim, out_dim):
    k1, k2 = jax.random.split(key)
    bound = 1.0 / np.sqrt(in_dim)
    W = jax.random.uniform(k1, (out_dim, in_dim), jnp.float32, -bound, bound)
    b = jax.random.uniform(k2, (out_dim,), jnp.float32, -bound, bound)
    return W, b


def reference_forward(left_idx, right_idx, x_emb, Wx, Wl, Wr, b):
    """Pure-numpy post-order reference of the module's recurrence (validation)."""
    left_idx = np.asarray(left_idx)
    right_idx = np.asarray(right_idx)
    x_emb = np.asarray(x_emb)
    Wx, Wl, Wr, b = np.asarray(Wx), np.asarray(Wl), np.asarray(Wr), np.asarray(b)
    N, _ = x_emb.shape
    H = Wl.shape[0]
    h = np.zeros((N + 1, H), np.float32)
    c = np.zeros((N + 1, H), np.float32)
    xp = x_emb @ Wx + b
    sig = lambda v: 1.0 / (1.0 + np.exp(-v))
    for t in range(N):
        g = xp[t] + h[left_idx[t]] @ Wl + h[right_idx[t]] @ Wr
        i, f, o, u = sig(g[:H]), sig(g[H:2 * H]), sig(g[2 * H:3 * H]), np.tanh(g[3 * H:])
        cc = i * u + f * c[left_idx[t]] + f * c[right_idx[t]]
        hh = o * np.tanh(cc)
        c[t], h[t] = cc, hh
    return h[:N], (c[N - 1:N], h[N - 1:N])


if __name__ == "__main__":
    vocab_size = 50
    embed_dim = 64
    hidden_size = 128   # multiple of 128 -> lane-aligned gate slices
    seq_len = 8

    key = jax.random.PRNGKey(0)
    keys = jax.random.split(key, 14)

    # Parameters (deterministic, PyTorch-default-like uniform init).
    emb_table = jax.random.normal(keys[0], (vocab_size, embed_dim), jnp.float32)
    W_ix, b_ix = init_linear(keys[1], embed_dim, hidden_size)
    W_il, b_il = init_linear(keys[2], hidden_size, hidden_size)
    W_ir, b_ir = init_linear(keys[3], hidden_size, hidden_size)
    W_fx, b_fx = init_linear(keys[4], embed_dim, hidden_size)
    W_fl, b_fl = init_linear(keys[5], hidden_size, hidden_size)
    W_fr, b_fr = init_linear(keys[6], hidden_size, hidden_size)
    W_ox, b_ox = init_linear(keys[7], embed_dim, hidden_size)
    W_ol, b_ol = init_linear(keys[8], hidden_size, hidden_size)
    W_or, b_or = init_linear(keys[9], hidden_size, hidden_size)
    W_ux, b_ux = init_linear(keys[10], embed_dim, hidden_size)
    W_ul, b_ul = init_linear(keys[11], hidden_size, hidden_size)
    W_ur, b_ur = init_linear(keys[12], hidden_size, hidden_size)

    # Combined gate weights: y = x @ W.T for each nn.Linear, gates stacked [i|f|o|u].
    Wx = jnp.concatenate([W_ix, W_fx, W_ox, W_ux], axis=0).T        # (E, 4H)
    Wl = jnp.concatenate([W_il, W_fl, W_ol, W_ul], axis=0).T        # (H, 4H)
    Wr = jnp.concatenate([W_ir, W_fr, W_or, W_ur], axis=0).T        # (H, 4H)
    b = jnp.concatenate([b_ix + b_il + b_ir,
                         b_fx + b_fl + b_fr,
                         b_ox + b_ol + b_or,
                         b_ux + b_ul + b_ur], axis=0).reshape(1, -1)  # (1, 4H)

    # Sentence token ids and the binary parse tree (root has one child, as in forward()).
    inputs = jax.random.randint(keys[13], (seq_len,), 0, vocab_size, dtype=jnp.int32)
    root_node = Node(idx=None, children=[build_balanced(0, seq_len)])

    # Linearize the processed subtree (root_node.children[0]) and build the level schedule.
    records = linearize(root_node.children[0])
    N = len(records)
    D, L_max, level_count, left_rows, right_rows, row_of_post = build_level_schedule(records)

    # Host-side glue: embedding gather (zero embedding for idx=None nodes) and the
    # per-node input projection xp = x @ Wx + b, level-major.
    emb_np = np.asarray(emb_table)
    tok_np = np.asarray(inputs)
    x_post = np.zeros((N, embed_dim), np.float32)            # post-order (for the reference)
    for post, (iidx, _, _, _) in enumerate(records):
        if iidx >= 0:
            x_post[post] = emb_np[tok_np[iidx]]
    x_sched = np.zeros((D * L_max, embed_dim), np.float32)   # level-major
    for post in range(N):
        x_sched[row_of_post[post]] = x_post[post]
    xp_sched = (x_sched @ np.asarray(Wx) + np.asarray(b)).astype(np.float32)  # (D*L_max, 4H)

    # Recurrent weights fused and cast for the MXU: [Wl; Wr] -> (2H, 4H) bf16.
    W_rec = jnp.concatenate([Wl, Wr], axis=0).astype(jnp.bfloat16)

    outputs, final_state = tree_lstm_pallas(
        jnp.asarray(level_count), jnp.asarray(left_rows), jnp.asarray(right_rows),
        jnp.asarray(xp_sched), W_rec, row_of_post)
    jax.block_until_ready((outputs, final_state))

    # Validate against a pure-numpy f32 post-order reference of the same recurrence
    # (bf16 MXU inputs -> relaxed tolerances).
    zero_slot = N
    left_post = np.array([r[1] if r[1] >= 0 else zero_slot for r in records], np.int32)
    right_post = np.array([r[2] if r[2] >= 0 else zero_slot for r in records], np.int32)
    ref_out, (ref_c, ref_h) = reference_forward(left_post, right_post, x_post, Wx, Wl, Wr, b)
    np.testing.assert_allclose(np.asarray(outputs), ref_out, rtol=1e-2, atol=1e-2)
    np.testing.assert_allclose(np.asarray(final_state[0]), ref_c, rtol=1e-2, atol=1e-2)
    np.testing.assert_allclose(np.asarray(final_state[1]), ref_h, rtol=1e-2, atol=1e-2)

    print("KERNEL_OK")
</pallas_src>

<mosaic_0001>
module attributes {stable_mosaic.version = 11 : i64} {
  func.func @tree_lstm_level_kernel(%arg0: i32, %arg1: memref<4xi32, #tpu.memory_space<smem>>, %arg2: memref<32xi32, #tpu.memory_space<smem>>, %arg3: memref<32xi32, #tpu.memory_space<smem>>, %arg4: memref<8x512xf32, #tpu.memory_space<vmem>>, %arg5: memref<256x512xbf16, #tpu.memory_space<vmem>>, %arg6: memref<32x256xf32, #tpu.memory_space<vmem>>, %arg7: memref<8x256xf32, #tpu.memory_space<vmem>>, %arg8: memref<8x128xf32, #tpu.memory_space<vmem>>) attributes {dimension_semantics = [#tpu.dimension_semantics<arbitrary>], iteration_bounds = array<i64: 4>, scalar_prefetch = 3 : i64, scratch_operands = 2 : i64, tpu.core_type = #tpu.core_type<tc>, window_params = [{transform_indices = @transform_0, window_bounds = array<i64: 8, 512>}, {pipeline_mode = #tpu.pipeline_mode<synchronous>, transform_indices = @transform_1, window_bounds = array<i64: 256, 512>}, {pipeline_mode = #tpu.pipeline_mode<synchronous>, transform_indices = @transform_2, window_bounds = array<i64: 32, 256>}]} {
    %c8_i32 = arith.constant 8 : i32
    %0 = arith.muli %arg0, %c8_i32 : i32
    %1 = arith.index_cast %arg0 : i32 to index
    %2 = memref.load %arg1[%1] : memref<4xi32, #tpu.memory_space<smem>>
    %c0_i32 = arith.constant 0 : i32
    %3 = arith.cmpi eq, %arg0, %c0_i32 : i32
    %4 = arith.extui %3 : i1 to i32
    %c0_i32_0 = arith.constant 0 : i32
    %5 = arith.cmpi ne, %4, %c0_i32_0 : i32
    scf.if %5 {
      %cst_14 = arith.constant 0.000000e+00 : f32
      %46 = vector.broadcast %cst_14 : f32 to vector<8x256xf32>
      %c0_15 = arith.constant 0 : index
      %c0_16 = arith.constant 0 : index
      %47 = vector.load %arg7[%c0_15, %c0_16] : memref<8x256xf32, #tpu.memory_space<vmem>>, vector<8x256xf32>
      tpu.vector_store %arg7[%c0_15, %c0_16], %46 {strides = array<i32>} : memref<8x256xf32, #tpu.memory_space<vmem>>, vector<8x256xf32>,
      %cst_17 = arith.constant 0.000000e+00 : f32
      %48 = vector.broadcast %cst_17 : f32 to vector<8x128xf32>
      %c0_18 = arith.constant 0 : index
      %c0_19 = arith.constant 0 : index
      %49 = vector.load %arg8[%c0_18, %c0_19] : memref<8x128xf32, #tpu.memory_space<vmem>>, vector<8x128xf32>
      tpu.vector_store %arg8[%c0_18, %c0_19], %48 {strides = array<i32>} : memref<8x128xf32, #tpu.memory_space<vmem>>, vector<8x128xf32>,
    } else {
    }
    %c0_i32_1 = arith.constant 0 : i32
    %6 = arith.cmpi sgt, %arg0, %c0_i32_1 : i32
    %7 = arith.extui %6 : i1 to i32
    %c0_i32_2 = arith.constant 0 : i32
    %8 = arith.cmpi ne, %7, %c0_i32_2 : i32
    scf.if %8 {
      %c0_i32_14 = arith.constant 0 : i32
      %46 = arith.cmpi sgt, %2, %c0_i32_14 : i32
      %47 = arith.extui %46 : i1 to i32
      %c0_i32_15 = arith.constant 0 : i32
      %48 = arith.cmpi ne, %47, %c0_i32_15 : i32
      scf.if %48 {
        %c0_i32_23 = arith.constant 0 : i32
        %70 = arith.addi %0, %c0_i32_23 : i32
        %71 = arith.index_cast %70 : i32 to index
        %72 = memref.load %arg2[%71] : memref<32xi32, #tpu.memory_space<smem>>
        %c0_i32_24 = arith.constant 0 : i32
        %73 = arith.addi %0, %c0_i32_24 : i32
        %74 = arith.index_cast %73 : i32 to index
        %75 = memref.load %arg3[%74] : memref<32xi32, #tpu.memory_space<smem>>
        %76 = arith.index_cast %72 : i32 to index
        %c0_25 = arith.constant 0 : index
        %77 = vector.load %arg6[%76, %c0_25] : memref<32x256xf32, #tpu.memory_space<vmem>>, vector<1x256xf32>
        %78 = arith.index_cast %75 : i32 to index
        %c0_26 = arith.constant 0 : index
        %79 = vector.load %arg6[%78, %c0_26] : memref<32x256xf32, #tpu.memory_space<vmem>>, vector<1x256xf32>
        %80 = vector.extract_strided_slice %77 {offsets = [0, 0], sizes = [1, 128], strides = [1, 1]} : vector<1x256xf32> to vector<1x128xf32>
        %c0_27 = arith.constant 0 : index
        %c0_28 = arith.constant 0 : index
        %81 = vector.load %arg7[%c0_27, %c0_28] : memref<8x256xf32, #tpu.memory_space<vmem>>, vector<1x128xf32>
        tpu.vector_store %arg7[%c0_27, %c0_28], %80 {strides = array<i32>} : memref<8x256xf32, #tpu.memory_space<vmem>>, vector<1x128xf32>,
        %82 = vector.extract_strided_slice %79 {offsets = [0, 0], sizes = [1, 128], strides = [1, 1]} : vector<1x256xf32> to vector<1x128xf32>
        %c0_29 = arith.constant 0 : index
        %c128_30 = arith.constant 128 : index
        %83 = vector.load %arg7[%c0_29, %c128_30] : memref<8x256xf32, #tpu.memory_space<vmem>>, vector<1x128xf32>
        tpu.vector_store %arg7[%c0_29, %c128_30], %82 {strides = array<i32>} : memref<8x256xf32, #tpu.memory_space<vmem>>, vector<1x128xf32>,
        %84 = vector.extract_strided_slice %77 {offsets = [0, 128], sizes = [1, 128], strides = [1, 1]} : vector<1x256xf32> to vector<1x128xf32>
        %85 = vector.extract_strided_slice %79 {offsets = [0, 128], sizes = [1, 128], strides = [1, 1]} : vector<1x256xf32> to vector<1x128xf32>
        %86 = arith.addf %84, %85 : vector<1x128xf32>
        %c0_31 = arith.constant 0 : index
        %c0_32 = arith.constant 0 : index
        %87 = vector.load %arg8[%c0_31, %c0_32] : memref<8x128xf32, #tpu.memory_space<vmem>>, vector<1x128xf32>
        tpu.vector_store %arg8[%c0_31, %c0_32], %86 {strides = array<i32>} : memref<8x128xf32, #tpu.memory_space<vmem>>, vector<1x128xf32>,
      } else {
      }
      %c1_i32 = arith.constant 1 : i32
      %49 = arith.cmpi sgt, %2, %c1_i32 : i32
      %50 = arith.extui %49 : i1 to i32
      %c0_i32_16 = arith.constant 0 : i32
      %51 = arith.cmpi ne, %50, %c0_i32_16 : i32
      scf.if %51 {
        %c1_i32_23 = arith.constant 1 : i32
        %70 = arith.addi %0, %c1_i32_23 : i32
        %71 = arith.index_cast %70 : i32 to index
        %72 = memref.load %arg2[%71] : memref<32xi32, #tpu.memory_space<smem>>
        %c1_i32_24 = arith.constant 1 : i32
        %73 = arith.addi %0, %c1_i32_24 : i32
        %74 = arith.index_cast %73 : i32 to index
        %75 = memref.load %arg3[%74] : memref<32xi32, #tpu.memory_space<smem>>
        %76 = arith.index_cast %72 : i32 to index
        %c0_25 = arith.constant 0 : index
        %77 = vector.load %arg6[%76, %c0_25] : memref<32x256xf32, #tpu.memory_space<vmem>>, vector<1x256xf32>
        %78 = arith.index_cast %75 : i32 to index
        %c0_26 = arith.constant 0 : index
        %79 = vector.load %arg6[%78, %c0_26] : memref<32x256xf32, #tpu.memory_space<vmem>>, vector<1x256xf32>
        %80 = vector.extract_strided_slice %77 {offsets = [0, 0], sizes = [1, 128], strides = [1, 1]} : vector<1x256xf32> to vector<1x128xf32>
        %c1 = arith.constant 1 : index
        %c0_27 = arith.constant 0 : index
        %81 = vector.load %arg7[%c1, %c0_27] : memref<8x256xf32, #tpu.memory_space<vmem>>, vector<1x128xf32>
        tpu.vector_store %arg7[%c1, %c0_27], %80 {strides = array<i32>} : memref<8x256xf32, #tpu.memory_space<vmem>>, vector<1x128xf32>,
        %82 = vector.extract_strided_slice %79 {offsets = [0, 0], sizes = [1, 128], strides = [1, 1]} : vector<1x256xf32> to vector<1x128xf32>
        %c1_28 = arith.constant 1 : index
        %c128_29 = arith.constant 128 : index
        %83 = vector.load %arg7[%c1_28, %c128_29] : memref<8x256xf32, #tpu.memory_space<vmem>>, vector<1x128xf32>
        tpu.vector_store %arg7[%c1_28, %c128_29], %82 {strides = array<i32>} : memref<8x256xf32, #tpu.memory_space<vmem>>, vector<1x128xf32>,
        %84 = vector.extract_strided_slice %77 {offsets = [0, 128], sizes = [1, 128], strides = [1, 1]} : vector<1x256xf32> to vector<1x128xf32>
        %85 = vector.extract_strided_slice %79 {offsets = [0, 128], sizes = [1, 128], strides = [1, 1]} : vector<1x256xf32> to vector<1x128xf32>
        %86 = arith.addf %84, %85 : vector<1x128xf32>
        %c1_30 = arith.constant 1 : index
        %c0_31 = arith.constant 0 : index
        %87 = vector.load %arg8[%c1_30, %c0_31] : memref<8x128xf32, #tpu.memory_space<vmem>>, vector<1x128xf32>
        tpu.vector_store %arg8[%c1_30, %c0_31], %86 {strides = array<i32>} : memref<8x128xf32, #tpu.memory_space<vmem>>, vector<1x128xf32>,
      } else {
      }
      %c2_i32 = arith.constant 2 : i32
      %52 = arith.cmpi sgt, %2, %c2_i32 : i32
      %53 = arith.extui %52 : i1 to i32
      %c0_i32_17 = arith.constant 0 : i32
      %54 = arith.cmpi ne, %53, %c0_i32_17 : i32
      scf.if %54 {
        %c2_i32_23 = arith.constant 2 : i32
        %70 = arith.addi %0, %c2_i32_23 : i32
        %71 = arith.index_cast %70 : i32 to index
        %72 = memref.load %arg2[%71] : memref<32xi32, #tpu.memory_space<smem>>
        %c2_i32_24 = arith.constant 2 : i32
        %73 = arith.addi %0, %c2_i32_24 : i32
        %74 = arith.index_cast %73 : i32 to index
        %75 = memref.load %arg3[%74] : memref<32xi32, #tpu.memory_space<smem>>
        %76 = arith.index_cast %72 : i32 to index
        %c0_25 = arith.constant 0 : index
        %77 = vector.load %arg6[%76, %c0_25] : memref<32x256xf32, #tpu.memory_space<vmem>>, vector<1x256xf32>
        %78 = arith.index_cast %75 : i32 to index
        %c0_26 = arith.constant 0 : index
        %79 = vector.load %arg6[%78, %c0_26] : memref<32x256xf32, #tpu.memory_space<vmem>>, vector<1x256xf32>
        %80 = vector.extract_strided_slice %77 {offsets = [0, 0], sizes = [1, 128], strides = [1, 1]} : vector<1x256xf32> to vector<1x128xf32>
        %c2 = arith.constant 2 : index
        %c0_27 = arith.constant 0 : index
        %81 = vector.load %arg7[%c2, %c0_27] : memref<8x256xf32, #tpu.memory_space<vmem>>, vector<1x128xf32>
        tpu.vector_store %arg7[%c2, %c0_27], %80 {strides = array<i32>} : memref<8x256xf32, #tpu.memory_space<vmem>>, vector<1x128xf32>,
        %82 = vector.extract_strided_slice %79 {offsets = [0, 0], sizes = [1, 128], strides = [1, 1]} : vector<1x256xf32> to vector<1x128xf32>
        %c2_28 = arith.constant 2 : index
        %c128_29 = arith.constant 128 : index
        %83 = vector.load %arg7[%c2_28, %c128_29] : memref<8x256xf32, #tpu.memory_space<vmem>>, vector<1x128xf32>
        tpu.vector_store %arg7[%c2_28, %c128_29], %82 {strides = array<i32>} : memref<8x256xf32, #tpu.memory_space<vmem>>, vector<1x128xf32>,
        %84 = vector.extract_strided_slice %77 {offsets = [0, 128], sizes = [1, 128], strides = [1, 1]} : vector<1x256xf32> to vector<1x128xf32>
        %85 = vector.extract_strided_slice %79 {offsets = [0, 128], sizes = [1, 128], strides = [1, 1]} : vector<1x256xf32> to vector<1x128xf32>
        %86 = arith.addf %84, %85 : vector<1x128xf32>
        %c2_30 = arith.constant 2 : index
        %c0_31 = arith.constant 0 : index
        %87 = vector.load %arg8[%c2_30, %c0_31] : memref<8x128xf32, #tpu.memory_space<vmem>>, vector<1x128xf32>
        tpu.vector_store %arg8[%c2_30, %c0_31], %86 {strides = array<i32>} : memref<8x128xf32, #tpu.memory_space<vmem>>, vector<1x128xf32>,
      } else {
      }
      %c3_i32 = arith.constant 3 : i32
      %55 = arith.cmpi sgt, %2, %c3_i32 : i32
      %56 = arith.extui %55 : i1 to i32
      %c0_i32_18 = arith.constant 0 : i32
      %57 = arith.cmpi ne, %56, %c0_i32_18 : i32
      scf.if %57 {
        %c3_i32_23 = arith.constant 3 : i32
        %70 = arith.addi %0, %c3_i32_23 : i32
        %71 = arith.index_cast %70 : i32 to index
        %72 = memref.load %arg2[%71] : memref<32xi32, #tpu.memory_space<smem>>
        %c3_i32_24 = arith.constant 3 : i32
        %73 = arith.addi %0, %c3_i32_24 : i32
        %74 = arith.index_cast %73 : i32 to index
        %75 = memref.load %arg3[%74] : memref<32xi32, #tpu.memory_space<smem>>
        %76 = arith.index_cast %72 : i32 to index
        %c0_25 = arith.constant 0 : index
        %77 = vector.load %arg6[%76, %c0_25] : memref<32x256xf32, #tpu.memory_space<vmem>>, vector<1x256xf32>
        %78 = arith.index_cast %75 : i32 to index
        %c0_26 = arith.constant 0 : index
        %79 = vector.load %arg6[%78, %c0_26] : memref<32x256xf32, #tpu.memory_space<vmem>>, vector<1x256xf32>
        %80 = vector.extract_strided_slice %77 {offsets = [0, 0], sizes = [1, 128], strides = [1, 1]} : vector<1x256xf32> to vector<1x128xf32>
        %c3 = arith.constant 3 : index
        %c0_27 = arith.constant 0 : index
        %81 = vector.load %arg7[%c3, %c0_27] : memref<8x256xf32, #tpu.memory_space<vmem>>, vector<1x128xf32>
        tpu.vector_store %arg7[%c3, %c0_27], %80 {strides = array<i32>} : memref<8x256xf32, #tpu.memory_space<vmem>>, vector<1x128xf32>,
        %82 = vector.extract_strided_slice %79 {offsets = [0, 0], sizes = [1, 128], strides = [1, 1]} : vector<1x256xf32> to vector<1x128xf32>
        %c3_28 = arith.constant 3 : index
        %c128_29 = arith.constant 128 : index
        %83 = vector.load %arg7[%c3_28, %c128_29] : memref<8x256xf32, #tpu.memory_space<vmem>>, vector<1x128xf32>
        tpu.vector_store %arg7[%c3_28, %c128_29], %82 {strides = array<i32>} : memref<8x256xf32, #tpu.memory_space<vmem>>, vector<1x128xf32>,
        %84 = vector.extract_strided_slice %77 {offsets = [0, 128], sizes = [1, 128], strides = [1, 1]} : vector<1x256xf32> to vector<1x128xf32>
        %85 = vector.extract_strided_slice %79 {offsets = [0, 128], sizes = [1, 128], strides = [1, 1]} : vector<1x256xf32> to vector<1x128xf32>
        %86 = arith.addf %84, %85 : vector<1x128xf32>
        %c3_30 = arith.constant 3 : index
        %c0_31 = arith.constant 0 : index
        %87 = vector.load %arg8[%c3_30, %c0_31] : memref<8x128xf32, #tpu.memory_space<vmem>>, vector<1x128xf32>
        tpu.vector_store %arg8[%c3_30, %c0_31], %86 {strides = array<i32>} : memref<8x128xf32, #tpu.memory_space<vmem>>, vector<1x128xf32>,
      } else {
      }
      %c4_i32 = arith.constant 4 : i32
      %58 = arith.cmpi sgt, %2, %c4_i32 : i32
      %59 = arith.extui %58 : i1 to i32
      %c0_i32_19 = arith.constant 0 : i32
      %60 = arith.cmpi ne, %59, %c0_i32_19 : i32
      scf.if %60 {
        %c4_i32_23 = arith.constant 4 : i32
        %70 = arith.addi %0, %c4_i32_23 : i32
        %71 = arith.index_cast %70 : i32 to index
        %72 = memref.load %arg2[%71] : memref<32xi32, #tpu.memory_space<smem>>
        %c4_i32_24 = arith.constant 4 : i32
        %73 = arith.addi %0, %c4_i32_24 : i32
        %74 = arith.index_cast %73 : i32 to index
        %75 = memref.load %arg3[%74] : memref<32xi32, #tpu.memory_space<smem>>
        %76 = arith.index_cast %72 : i32 to index
        %c0_25 = arith.constant 0 : index
        %77 = vector.load %arg6[%76, %c0_25] : memref<32x256xf32, #tpu.memory_space<vmem>>, vector<1x256xf32>
        %78 = arith.index_cast %75 : i32 to index
        %c0_26 = arith.constant 0 : index
        %79 = vector.load %arg6[%78, %c0_26] : memref<32x256xf32, #tpu.memory_space<vmem>>, vector<1x256xf32>
        %80 = vector.extract_strided_slice %77 {offsets = [0, 0], sizes = [1, 128], strides = [1, 1]} : vector<1x256xf32> to vector<1x128xf32>
        %c4 = arith.constant 4 : index
        %c0_27 = arith.constant 0 : index
        %81 = vector.load %arg7[%c4, %c0_27] : memref<8x256xf32, #tpu.memory_space<vmem>>, vector<1x128xf32>
        tpu.vector_store %arg7[%c4, %c0_27], %80 {strides = array<i32>} : memref<8x256xf32, #tpu.memory_space<vmem>>, vector<1x128xf32>,
        %82 = vector.extract_strided_slice %79 {offsets = [0, 0], sizes = [1, 128], strides = [1, 1]} : vector<1x256xf32> to vector<1x128xf32>
        %c4_28 = arith.constant 4 : index
        %c128_29 = arith.constant 128 : index
        %83 = vector.load %arg7[%c4_28, %c128_29] : memref<8x256xf32, #tpu.memory_space<vmem>>, vector<1x128xf32>
        tpu.vector_store %arg7[%c4_28, %c128_29], %82 {strides = array<i32>} : memref<8x256xf32, #tpu.memory_space<vmem>>, vector<1x128xf32>,
        %84 = vector.extract_strided_slice %77 {offsets = [0, 128], sizes = [1, 128], strides = [1, 1]} : vector<1x256xf32> to vector<1x128xf32>
        %85 = vector.extract_strided_slice %79 {offsets = [0, 128], sizes = [1, 128], strides = [1, 1]} : vector<1x256xf32> to vector<1x128xf32>
        %86 = arith.addf %84, %85 : vector<1x128xf32>
        %c4_30 = arith.constant 4 : index
        %c0_31 = arith.constant 0 : index
        %87 = vector.load %arg8[%c4_30, %c0_31] : memref<8x128xf32, #tpu.memory_space<vmem>>, vector<1x128xf32>
        tpu.vector_store %arg8[%c4_30, %c0_31], %86 {strides = array<i32>} : memref<8x128xf32, #tpu.memory_space<vmem>>, vector<1x128xf32>,
      } else {
      }
      %c5_i32 = arith.constant 5 : i32
      %61 = arith.cmpi sgt, %2, %c5_i32 : i32
      %62 = arith.extui %61 : i1 to i32
      %c0_i32_20 = arith.constant 0 : i32
      %63 = arith.cmpi ne, %62, %c0_i32_20 : i32
      scf.if %63 {
        %c5_i32_23 = arith.constant 5 : i32
        %70 = arith.addi %0, %c5_i32_23 : i32
        %71 = arith.index_cast %70 : i32 to index
        %72 = memref.load %arg2[%71] : memref<32xi32, #tpu.memory_space<smem>>
        %c5_i32_24 = arith.constant 5 : i32
        %73 = arith.addi %0, %c5_i32_24 : i32
        %74 = arith.index_cast %73 : i32 to index
        %75 = memref.load %arg3[%74] : memref<32xi32, #tpu.memory_space<smem>>
        %76 = arith.index_cast %72 : i32 to index
        %c0_25 = arith.constant 0 : index
        %77 = vector.load %arg6[%76, %c0_25] : memref<32x256xf32, #tpu.memory_space<vmem>>, vector<1x256xf32>
        %78 = arith.index_cast %75 : i32 to index
        %c0_26 = arith.constant 0 : index
        %79 = vector.load %arg6[%78, %c0_26] : memref<32x256xf32, #tpu.memory_space<vmem>>, vector<1x256xf32>
        %80 = vector.extract_strided_slice %77 {offsets = [0, 0], sizes = [1, 128], strides = [1, 1]} : vector<1x256xf32> to vector<1x128xf32>
        %c5 = arith.constant 5 : index
        %c0_27 = arith.constant 0 : index
        %81 = vector.load %arg7[%c5, %c0_27] : memref<8x256xf32, #tpu.memory_space<vmem>>, vector<1x128xf32>
        tpu.vector_store %arg7[%c5, %c0_27], %80 {strides = array<i32>} : memref<8x256xf32, #tpu.memory_space<vmem>>, vector<1x128xf32>,
        %82 = vector.extract_strided_slice %79 {offsets = [0, 0], sizes = [1, 128], strides = [1, 1]} : vector<1x256xf32> to vector<1x128xf32>
        %c5_28 = arith.constant 5 : index
        %c128_29 = arith.constant 128 : index
        %83 = vector.load %arg7[%c5_28, %c128_29] : memref<8x256xf32, #tpu.memory_space<vmem>>, vector<1x128xf32>
        tpu.vector_store %arg7[%c5_28, %c128_29], %82 {strides = array<i32>} : memref<8x256xf32, #tpu.memory_space<vmem>>, vector<1x128xf32>,
        %84 = vector.extract_strided_slice %77 {offsets = [0, 128], sizes = [1, 128], strides = [1, 1]} : vector<1x256xf32> to vector<1x128xf32>
        %85 = vector.extract_strided_slice %79 {offsets = [0, 128], sizes = [1, 128], strides = [1, 1]} : vector<1x256xf32> to vector<1x128xf32>
        %86 = arith.addf %84, %85 : vector<1x128xf32>
        %c5_30 = arith.constant 5 : index
        %c0_31 = arith.constant 0 : index
        %87 = vector.load %arg8[%c5_30, %c0_31] : memref<8x128xf32, #tpu.memory_space<vmem>>, vector<1x128xf32>
        tpu.vector_store %arg8[%c5_30, %c0_31], %86 {strides = array<i32>} : memref<8x128xf32, #tpu.memory_space<vmem>>, vector<1x128xf32>,
      } else {
      }
      %c6_i32 = arith.constant 6 : i32
      %64 = arith.cmpi sgt, %2, %c6_i32 : i32
      %65 = arith.extui %64 : i1 to i32
      %c0_i32_21 = arith.constant 0 : i32
      %66 = arith.cmpi ne, %65, %c0_i32_21 : i32
      scf.if %66 {
        %c6_i32_23 = arith.constant 6 : i32
        %70 = arith.addi %0, %c6_i32_23 : i32
        %71 = arith.index_cast %70 : i32 to index
        %72 = memref.load %arg2[%71] : memref<32xi32, #tpu.memory_space<smem>>
        %c6_i32_24 = arith.constant 6 : i32
        %73 = arith.addi %0, %c6_i32_24 : i32
        %74 = arith.index_cast %73 : i32 to index
        %75 = memref.load %arg3[%74] : memref<32xi32, #tpu.memory_space<smem>>
        %76 = arith.index_cast %72 : i32 to index
        %c0_25 = arith.constant 0 : index
        %77 = vector.load %arg6[%76, %c0_25] : memref<32x256xf32, #tpu.memory_space<vmem>>, vector<1x256xf32>
        %78 = arith.index_cast %75 : i32 to index
        %c0_26 = arith.constant 0 : index
        %79 = vector.load %arg6[%78, %c0_26] : memref<32x256xf32, #tpu.memory_space<vmem>>, vector<1x256xf32>
        %80 = vector.extract_strided_slice %77 {offsets = [0, 0], sizes = [1, 128], strides = [1, 1]} : vector<1x256xf32> to vector<1x128xf32>
        %c6 = arith.constant 6 : index
        %c0_27 = arith.constant 0 : index
        %81 = vector.load %arg7[%c6, %c0_27] : memref<8x256xf32, #tpu.memory_space<vmem>>, vector<1x128xf32>
        tpu.vector_store %arg7[%c6, %c0_27], %80 {strides = array<i32>} : memref<8x256xf32, #tpu.memory_space<vmem>>, vector<1x128xf32>,
        %82 = vector.extract_strided_slice %79 {offsets = [0, 0], sizes = [1, 128], strides = [1, 1]} : vector<1x256xf32> to vector<1x128xf32>
        %c6_28 = arith.constant 6 : index
        %c128_29 = arith.constant 128 : index
        %83 = vector.load %arg7[%c6_28, %c128_29] : memref<8x256xf32, #tpu.memory_space<vmem>>, vector<1x128xf32>
        tpu.vector_store %arg7[%c6_28, %c128_29], %82 {strides = array<i32>} : memref<8x256xf32, #tpu.memory_space<vmem>>, vector<1x128xf32>,
        %84 = vector.extract_strided_slice %77 {offsets = [0, 128], sizes = [1, 128], strides = [1, 1]} : vector<1x256xf32> to vector<1x128xf32>
        %85 = vector.extract_strided_slice %79 {offsets = [0, 128], sizes = [1, 128], strides = [1, 1]} : vector<1x256xf32> to vector<1x128xf32>
        %86 = arith.addf %84, %85 : vector<1x128xf32>
        %c6_30 = arith.constant 6 : index
        %c0_31 = arith.constant 0 : index
        %87 = vector.load %arg8[%c6_30, %c0_31] : memref<8x128xf32, #tpu.memory_space<vmem>>, vector<1x128xf32>
        tpu.vector_store %arg8[%c6_30, %c0_31], %86 {strides = array<i32>} : memref<8x128xf32, #tpu.memory_space<vmem>>, vector<1x128xf32>,
      } else {
      }
      %c7_i32 = arith.constant 7 : i32
      %67 = arith.cmpi sgt, %2, %c7_i32 : i32
      %68 = arith.extui %67 : i1 to i32
      %c0_i32_22 = arith.constant 0 : i32
      %69 = arith.cmpi ne, %68, %c0_i32_22 : i32
      scf.if %69 {
        %c7_i32_23 = arith.constant 7 : i32
        %70 = arith.addi %0, %c7_i32_23 : i32
        %71 = arith.index_cast %70 : i32 to index
        %72 = memref.load %arg2[%71] : memref<32xi32, #tpu.memory_space<smem>>
        %c7_i32_24 = arith.constant 7 : i32
        %73 = arith.addi %0, %c7_i32_24 : i32
        %74 = arith.index_cast %73 : i32 to index
        %75 = memref.load %arg3[%74] : memref<32xi32, #tpu.memory_space<smem>>
        %76 = arith.index_cast %72 : i32 to index
        %c0_25 = arith.constant 0 : index
        %77 = vector.load %arg6[%76, %c0_25] : memref<32x256xf32, #tpu.memory_space<vmem>>, vector<1x256xf32>
        %78 = arith.index_cast %75 : i32 to index
        %c0_26 = arith.constant 0 : index
        %79 = vector.load %arg6[%78, %c0_26] : memref<32x256xf32, #tpu.memory_space<vmem>>, vector<1x256xf32>
        %80 = vector.extract_strided_slice %77 {offsets = [0, 0], sizes = [1, 128], strides = [1, 1]} : vector<1x256xf32> to vector<1x128xf32>
        %c7 = arith.constant 7 : index
        %c0_27 = arith.constant 0 : index
        %81 = vector.load %arg7[%c7, %c0_27] : memref<8x256xf32, #tpu.memory_space<vmem>>, vector<1x128xf32>
        tpu.vector_store %arg7[%c7, %c0_27], %80 {strides = array<i32>} : memref<8x256xf32, #tpu.memory_space<vmem>>, vector<1x128xf32>,
        %82 = vector.extract_strided_slice %79 {offsets = [0, 0], sizes = [1, 128], strides = [1, 1]} : vector<1x256xf32> to vector<1x128xf32>
        %c7_28 = arith.constant 7 : index
        %c128_29 = arith.constant 128 : index
        %83 = vector.load %arg7[%c7_28, %c128_29] : memref<8x256xf32, #tpu.memory_space<vmem>>, vector<1x128xf32>
        tpu.vector_store %arg7[%c7_28, %c128_29], %82 {strides = array<i32>} : memref<8x256xf32, #tpu.memory_space<vmem>>, vector<1x128xf32>,
        %84 = vector.extract_strided_slice %77 {offsets = [0, 128], sizes = [1, 128], strides = [1, 1]} : vector<1x256xf32> to vector<1x128xf32>
        %85 = vector.extract_strided_slice %79 {offsets = [0, 128], sizes = [1, 128], strides = [1, 1]} : vector<1x256xf32> to vector<1x128xf32>
        %86 = arith.addf %84, %85 : vector<1x128xf32>
        %c7_30 = arith.constant 7 : index
        %c0_31 = arith.constant 0 : index
        %87 = vector.load %arg8[%c7_30, %c0_31] : memref<8x128xf32, #tpu.memory_space<vmem>>, vector<1x128xf32>
        tpu.vector_store %arg8[%c7_30, %c0_31], %86 {strides = array<i32>} : memref<8x128xf32, #tpu.memory_space<vmem>>, vector<1x128xf32>,
      } else {
      }
    } else {
    }
    %c0 = arith.constant 0 : index
    %c0_3 = arith.constant 0 : index
    %9 = vector.load %arg4[%c0, %c0_3] : memref<8x512xf32, #tpu.memory_space<vmem>>, vector<8x512xf32>
    %c0_4 = arith.constant 0 : index
    %c0_5 = arith.constant 0 : index
    %10 = vector.load %arg7[%c0_4, %c0_5] : memref<8x256xf32, #tpu.memory_space<vmem>>, vector<8x256xf32>
    %11 = arith.truncf %10 : vector<8x256xf32> to vector<8x256xbf16>
    %c0_6 = arith.constant 0 : index
    %c0_7 = arith.constant 0 : index
    %12 = vector.load %arg5[%c0_6, %c0_7] : memref<256x512xbf16, #tpu.memory_space<vmem>>, vector<256x512xbf16>
    %cst = arith.constant dense<0.000000e+00> : vector<8x512xf32>
    %13 = tpu.matmul %11, %12, %cst {dimension_numbers = #tpu.dot_dimension_numbers<[1], [0], [0], [1], [0, 0, 1, 1], [], []>} : vector<8x256xbf16>, vector<256x512xbf16>, vector<8x512xf32> -> vector<8x512xf32>
    %14 = arith.addf %9, %13 : vector<8x512xf32>
    %15 = vector.extract_strided_slice %14 {offsets = [0, 0], sizes = [8, 128], strides = [1, 1]} : vector<8x512xf32> to vector<8x128xf32>
    %16 = arith.negf %15 : vector<8x128xf32>
    %17 = math.exp %16 : vector<8x128xf32>
    %cst_8 = arith.constant 1.000000e+00 : f32
    %18 = vector.broadcast %cst_8 : f32 to vector<8x128xf32>
    %19 = arith.addf %18, %17 : vector<8x128xf32>
    %20 = arith.divf %18, %19 : vector<8x128xf32>
    %21 = vector.extract_strided_slice %14 {offsets = [0, 128], sizes = [8, 128], strides = [1, 1]} : vector<8x512xf32> to vector<8x128xf32>
    %22 = arith.negf %21 : vector<8x128xf32>
    %23 = math.exp %22 : vector<8x128xf32>
    %cst_9 = arith.constant 1.000000e+00 : f32
    %24 = vector.broadcast %cst_9 : f32 to vector<8x128xf32>
    %25 = arith.addf %24, %23 : vector<8x128xf32>
    %26 = arith.divf %24, %25 : vector<8x128xf32>
    %27 = vector.extract_strided_slice %14 {offsets = [0, 256], sizes = [8, 128], strides = [1, 1]} : vector<8x512xf32> to vector<8x128xf32>
    %28 = arith.negf %27 : vector<8x128xf32>
    %29 = math.exp %28 : vector<8x128xf32>
    %cst_10 = arith.constant 1.000000e+00 : f32
    %30 = vector.broadcast %cst_10 : f32 to vector<8x128xf32>
    %31 = arith.addf %30, %29 : vector<8x128xf32>
    %32 = arith.divf %30, %31 : vector<8x128xf32>
    %33 = vector.extract_strided_slice %14 {offsets = [0, 384], sizes = [8, 128], strides = [1, 1]} : vector<8x512xf32> to vector<8x128xf32>
    %34 = math.tanh %33 : vector<8x128xf32>
    %35 = arith.mulf %20, %34 : vector<8x128xf32>
    %c0_11 = arith.constant 0 : index
    %c0_12 = arith.constant 0 : index
    %36 = vector.load %arg8[%c0_11, %c0_12] : memref<8x128xf32, #tpu.memory_space<vmem>>, vector<8x128xf32>
    %37 = arith.mulf %26, %36 : vector<8x128xf32>
    %38 = arith.addf %35, %37 : vector<8x128xf32>
    %39 = math.tanh %38 : vector<8x128xf32>
    %40 = arith.mulf %32, %39 : vector<8x128xf32>
    %41 = tpu.assume_multiple %0, 8 : i32
    %42 = arith.index_cast %41 : i32 to index
    %c0_13 = arith.constant 0 : index
    %43 = vector.load %arg6[%42, %c0_13] : memref<32x256xf32, #tpu.memory_space<vmem>>, vector<8x128xf32>
    tpu.vector_store %arg6[%42, %c0_13], %40 {strides = array<i32>} : memref<32x256xf32, #tpu.memory_space<vmem>>, vector<8x128xf32>,
    %44 = arith.index_cast %41 : i32 to index
    %c128 = arith.constant 128 : index
    %45 = vector.load %arg6[%44, %c128] : memref<32x256xf32, #tpu.memory_space<vmem>>, vector<8x128xf32>
    tpu.vector_store %arg6[%44, %c128], %38 {strides = array<i32>} : memref<32x256xf32, #tpu.memory_space<vmem>>, vector<8x128xf32>,
    return
  }
  func.func @transform_0(%arg0: i32, %arg1: memref<4xi32, #tpu.memory_space<smem>>, %arg2: memref<32xi32, #tpu.memory_space<smem>>, %arg3: memref<32xi32, #tpu.memory_space<smem>>) -> (i32, i32) {
    %c0_i32 = arith.constant 0 : i32
    %c0_i32_0 = arith.constant 0 : i32
    return %arg0, %c0_i32 : i32, i32
  }
  func.func @transform_1(%arg0: i32, %arg1: memref<4xi32, #tpu.memory_space<smem>>, %arg2: memref<32xi32, #tpu.memory_space<smem>>, %arg3: memref<32xi32, #tpu.memory_space<smem>>) -> (i32, i32) {
    %c0_i32 = arith.constant 0 : i32
    %c0_i32_0 = arith.constant 0 : i32
    %c0_i32_1 = arith.constant 0 : i32
    return %c0_i32, %c0_i32_0 : i32, i32
  }
  func.func @transform_2(%arg0: i32, %arg1: memref<4xi32, #tpu.memory_space<smem>>, %arg2: memref<32xi32, #tpu.memory_space<smem>>, %arg3: memref<32xi32, #tpu.memory_space<smem>>) -> (i32, i32) {
    %c0_i32 = arith.constant 0 : i32
    %c0_i32_0 = arith.constant 0 : i32
    %c0_i32_1 = arith.constant 0 : i32
    return %c0_i32, %c0_i32_0 : i32, i32
  }
}

</mosaic_0001>

<bundles_post_ra>
// kernel: tpu_custom_call.1
= control target key start
LH: loop header
LB: loop body
LE: loop exit
PB: predicated region body
PF: predicated region fallthrough
CT: control target
= control target key end

     0   :  { %s1834_s0 = inlined_call_operand.hbm [shape: s32[4], index: 0, kind: input, shape index: {}]   ;;  %s1835_s3 = inlined_call_operand.hbm [shape: f32[32,512], index: 3, kind: input, shape index: {}]   ;;  %s1836_s4 = inlined_call_operand.hbm [shape: bf16[256,512], index: 4, kind: input, shape index: {}]   ;;  %s1837_s5 = inlined_call_operand.hbm [shape: f32[32,256], index: 5, kind: output, shape index: {}]   ;;  %s1838_s1 = inlined_call_operand.vmem [shape: s32[32], index: 1, kind: input, shape index: {}]   ;;  %s1839_s2 = inlined_call_operand.vmem [shape: s32[32], index: 2, kind: input, shape index: {}]  }
   0x1   :  { %s1420_s20 = scalar_lea.hbm %s1834_s0, 16 }
   0x2   :  { %p1421_p0 = scmp.ne.s32.totalorder %s1834_s0, %s1420_s20  ;;  %p1424_p1 = scmp.lt.u32.totalorder %s1420_s20, %s1834_s0 }
   0x4   :  { %p1426_p2 = pnand %p1424_p1, %p1421_p0 }
   0x6   :  { %1429 = shalt.err (!%p1426_p2)  }
   0x7   :  { %s1584_s25 = smov [#allocation5]   ;;  %s12_s30 = sshll.u32 %s1838_s1, 4  ;;  %s13_s30 = int_to_ptr.vmem [resolvable:$true] %s12_s30 }
   0x8   :  { %11 = dma.hbm_to_smem %s1834_s0, 16, %s1584_s25, [#allocation4] }
   0x9   :  { %s16_s8 = sshll.u32 %s1839_s2, 4  ;;  %s1430_s9 = scalar_lea.vmem %s13_s30, 16  ;;  %s17_s8 = int_to_ptr.vmem [resolvable:$true] %s16_s8 }
   0xa   :  { %p1431_p3 = scmp.ne.s32.totalorder %s13_s30, %s1430_s9  ;;  %p1435_p4 = scmp.lt.s32.totalorder %s13_s30, %s13_s30 }
   0xb   :  { %p1436_p5 = scmp.lt.s32.totalorder %s1430_s9, %s1430_s9 }
   0xd   :  { %p1437_p6 = por %p1436_p5, %p1435_p4 }
   0xf   :  { %p1438_p7 = pnand %p1437_p6, %p1431_p3 }
  0x11   :  { %1441 = shalt.err (!%p1438_p7)  }
  0x12   :  { %s1585_s10 = smov [#allocation6]   ;;  %s1442_s0 = scalar_lea.vmem %s17_s8, 16 }
  0x13   :  { %15 = dma.vmem_to_smem %s13_s30, 16, %s1585_s10, [#allocation4] }
  0x14   :  { %p1443_p8 = scmp.ne.s32.totalorder %s17_s8, %s1442_s0  ;;  %p1447_p9 = scmp.lt.s32.totalorder %s17_s8, %s17_s8 }
  0x15   :  { %p1448_p10 = scmp.lt.s32.totalorder %s1442_s0, %s1442_s0 }
  0x17   :  { %p1449_p11 = por %p1448_p10, %p1447_p9 }
  0x19   :  { %p1450_p12 = pnand %p1449_p11, %p1443_p8 }
  0x1b   :  { %1453 = shalt.err (!%p1450_p12)  }
  0x1c   :  { %s1586_s1 = smov [#allocation7]  }
  0x1d   :  { %19 = dma.vmem_to_smem %s17_s8, 16, %s1586_s1, [#allocation4] }
  0x1e   :  { %1554 = dma.done.wait [#allocation4], 48 }
  0x1f   :  { %1555 = vsyncadd [#allocation4], 4294967248 }
  0x20   :  { %21 = sfence }
  0x21   :  { %22 = vsyncpa [#allocation9], 0 }
  0x22   :  { %24 = vsyncpa [#allocation9 + $0x1], 0 }
  0x23   :  { %25 = vsyncpa [#allocation12], 0 }
  0x24   :  { %26 = vsyncpa [#allocation10], 0  ;;  %s1643_s2 = smov 0   ;;  %s1645_s11 = smov 0  }
  0x25   :  { %s1647_s12 = smov 0   ;;  %s1649_s13 = smov 0  }
  0x26 LB: > { %s1662_s14 = sadd.s32 4294967295, %s1582_s13   ;;  %p52_p13 = scmp.ne.s32.totalorder %s1574_s11, %s1570_s2  ;;  %s1582_s13 = sphi %s1649_s13, %s1855_s13   ;;  %s1578_s12 = sphi %s1647_s12, %s1854_s12   ;;  %s1574_s11 = sphi %s1645_s11, %s1853_s11   ;;  %s1570_s2 = sphi %s1643_s2, %s1852_s2  }
  0x27   : > { %p1840_p0 = scmp.eq.s32.totalorder %s1662_s14, 0  ;;  %p1100_p1 = scmp.ge.s32.totalorder %s1582_s13, 1 }
  0x28   : > { %p105_p2 = scmp.lt.s32.totalorder %s1582_s13, 5  ;;  %s1587_s17 = smov [#allocation11]  }
  0x29   : > { %p1671_p4 = por %p1840_p0, %p52_p13  ;;  %s117_s18 = sshll.u32 %s1587_s17, 4  ;;  %s118_s18 = int_to_ptr.vmem [resolvable:$true] %s117_s18 }
  0x2a   : > { %p1675_p5 = pnand %p1100_p1, %p105_p2  ;;  %s1688_s20 = sadd.s32 1, %s1582_s13  }
  0x2b   : > { %s1843_s15 = scalar_select %p1671_p4, 1, 0 }
  0x2c   : > { %s1844_s16 = scalar_select %p1675_p5, 1, 0 }
  0x2d   : > { %p1253_p6 = pneg %p1675_p5  ;;  %s39_s21 = sadd.s32 1, %s1578_s12 }
  0x2e   : > { %s36_s22 = ssub.s32 %s1582_s13, %s1688_s20  ;;  %s1454_s25 = scalar_lea.hbm %s1836_s4, 8192 }
  0x2f   : > { %p1683_p7 = pnand %p1253_p6, %p1840_p0  ;;  %p1455_p8 = scmp.ne.s32.totalorder %s1836_s4, %s1454_s25 }
  0x30   : > { %p1461_p12 = scmp.lt.u32.totalorder %s1454_s25, %s1836_s4 }
  0x31   : > { %p1456_p9 = pneg %p1683_p7 }
  0x33   : > { %p1457_p10 = pnand %p1456_p9, %p1455_p8 }
  0x35   : > { %p1458_p11 = pneg %p1457_p10 }
  0x37   : > { %p1463_p13 = pnand %p1461_p12, %p1458_p11 }
  0x39   : > { %1466 = shalt.err (!%p1463_p13)
}
  0x3a   : > { %s1467_s30 = scalar_lea.vmem %s118_s18, 8192  ;;  %p1475_p3 = scmp.lt.s32.totalorder %s118_s18, %s118_s18 }
  0x3b   : > { %p1468_p1 = scmp.ne.s32.totalorder %s118_s18, %s1467_s30  ;;  %p1476_p0 = scmp.lt.s32.totalorder %s1467_s30, %s1467_s30 }
  0x3d   : > { %p1470_p2 = pnand %p1468_p1, %p1456_p9  ;;  %p1477_p4 = por %p1476_p0, %p1475_p3 }
  0x3f   : > { %p1471_p6 = pneg %p1470_p2 }
  0x41   : > { %p1478_p5 = pnand %p1477_p4, %p1471_p6 }
  0x43   : > { %1481 = shalt.err (!%p1478_p5)
}
  0x44   : > { %s1588_s6 = smov 256   ;;  %s1589_s7 = smov 16  }
  0x45   : > { %1256 = dma.hbm_to_vmem [thread:$0]  (!%p1683_p7), %s1836_s4, 8192, %s118_s18, [#allocation12], %s1588_s6, %s1588_s6, %s1589_s7  }
  0x46   : > { %p37_p8 = scmp.eq.s32.totalorder %s36_s22, 0  ;;  %p46_p9 = scmp.ne.s32.totalorder %s1578_s12, %s1574_s11 }
  0x47   : > { %p47_p0 = scmp.eq.s32.totalorder %s1582_s13, 0  ;;  %p1262_p3 = scmp.lt.s32.totalorder %s1582_s13, 4 }
  0x48   : > { %s1714_s10 = scalar_select %p37_p8, %s1578_s12, %s39_s21  }
  0x49   : > { %p48_p4 = por %p47_p0, %p46_p9  ;;  %s131_s0 = sand.u32 1, %s1578_s12  }
  0x4a   : > { %s1103_s1 = sshll.u32 %s131_s0, 5  ;;  %s1225_s2 = sshll.u32 %s1582_s13, 9 }
  0x4b   : > { %s1721_s24 = scalar_lea.hbm %s1835_s3, %s1225_s2  ;;  %s135_s18 = scalar_lea.vmem [#allocation8], %s1103_s1 }
  0x4c   : > { %s143_s19 = sshll.u32 %s135_s18, 4  ;;  %p1725_p5 = pnand %p1262_p3, %p48_p4  ;;  %s1723_s19 = int_to_ptr.vmem [resolvable:$true] %s143_s19 }
  0x4d   : > { %s132_s13 = scalar_lea.sflag [#allocation9], %s131_s0  ;;  %s1482_s22 = scalar_lea.hbm %s1721_s24, 512 }
  0x4e   : > { %p1483_p7 = scmp.ne.s32.totalorder %s1721_s24, %s1482_s22  ;;  %p1484_p10 = pneg %p1725_p5 }
  0x4f   : > { %s1487_s27 = scalar_lea.hbm %s1835_s3, 2048  ;;  %p1488_p13 = scmp.lt.u32.totalorder %s1721_s24, %s1835_s3 }
  0x50   : > { %p1485_p11 = pnand %p1484_p10, %p1483_p7  ;;  %p1489_p1 = scmp.lt.u32.totalorder %s1487_s27, %s1482_s22 }
  0x51   : > { %p1491_p6 = scmp.lt.u32.totalorder %s1482_s22, %s1721_s24 }
  0x52   : > { %p1486_p12 = pneg %p1485_p11  ;;  %p1490_p2 = por %p1489_p1, %p1488_p13 }
  0x54   : > { %p1492_p8 = por %p1491_p6, %p1490_p2 }
  0x56   : > { %p1493_p9 = pnand %p1492_p8, %p1486_p12 }
  0x58   : > { %1496 = shalt.err (!%p1493_p9)
}
  0x59   : > { %s1497_s30 = scalar_lea.vmem %s1723_s19, 512  ;;  %s1590_s6 = smov [#allocation8]  }
  0x5a   : > { %p1498_p0 = scmp.ne.s32.totalorder %s1723_s19, %s1497_s30  ;;  %s1502_s7 = sshll.u32 %s1590_s6, 4  ;;  %s1503_s7 = int_to_ptr.vmem [resolvable:$false] %s1502_s7 }
  0x5b   : > { %s1504_s8 = scalar_lea.vmem %s1503_s7, 1024  ;;  %p1505_p7 = scmp.lt.s32.totalorder %s1723_s19, %s1503_s7 }
  0x5c   : > { %p1500_p3 = pnand %p1498_p0, %p1484_p10  ;;  %p1506_p11 = scmp.lt.s32.totalorder %s1504_s8, %s1497_s30 }
  0x5e   : > { %p1501_p4 = pneg %p1500_p3  ;;  %p1507_p13 = por %p1506_p11, %p1505_p7 }
  0x60   : > { %p1508_p1 = pnand %p1507_p13, %p1501_p4 }
  0x62   : > { %1511 = shalt.err (!%p1508_p1)
}
  0x63   : > { %1260 = dma.hbm_to_vmem [thread:$0]  (!%p1725_p5), %s1721_s24, 512, %s1723_s19, %s132_s13  }
  0x64   : > { %p1847_p12 = scmp.ne.s32.totalorder %s1844_s16, 0 }
  0x65   : > { %s154_s9 = sand.u32 (!%p1847_p12), 1, %s1574_s11   ;;  %p1848_p10 = scmp.ne.s32.totalorder (!%p1847_p12), %s1843_s15, 0 }
  0x66   : > { %152 = sbr.rel (%p1847_p12) target bundleno = 629 (0x275), region = 28  ;;  %s1107_s0 = sshll.u32 (!%p1847_p12), %s154_s9, 5 }
  0x67   : > { %s155_s1 = scalar_lea.sflag (!%p1847_p12), [#allocation9], %s154_s9  ;;  %s1757_s2 = scalar_lea.vmem (!%p1847_p12), [#allocation8], %s1107_s0 }
  0x6d   : > { %1557 = dma.done.wait (%p1848_p10), %s155_s1, 512  }
  0x6e   : > { %1559 = vsyncadd (%p1848_p10), %s155_s1, 4294966784  ;;  %p1849_p2 = scmp.eq.s32.totalorder %s1662_s14, 0 }
  0x70   : > { %1561 = dma.done.wait (%p1849_p2), [#allocation12], 8192   ;;  %p1850_p5 = pmov %p1849_p2 }
  0x71   : > { %s1768_s16 = sshll.u32 %s1662_s14, 3  ;;  %s1771_s17 = sld [smem:[#allocation5 + %s1662_s14]] }
  0x72   : > { %1563 = vsyncadd (%p1850_p5), [#allocation12], 4294959104  ;;  %p1851_p6 = scmp.ne.s32.totalorder %s1662_s14, 0 }
  0x73   : > { %v1591_v0 = vmov (!%p1851_p6), 0.0  }
  0x74   : > { %183 = sbr.rel (%p1851_p6) target bundleno = 123 (0x7b), region = 40  ;;  %184 = vst [vmem:[#allocation2] sm:$0xff] (!%p1851_p6), %v1591_v0  ;;  %185 = vst [vmem:[#allocation2 + $0x8] sm:$0xff] (!%p1851_p6), %v1591_v0 }
  0x75   : > { %186 = vst [vmem:[#allocation3] sm:$0xff] (!%p1851_p6), %v1591_v0 }
  0x7b PF: > { %p1111_p8 = scmp.le.s32.totalorder %s1662_s14, 0 }
  0x7c   : > { %p1112_p9 = scmp.le.s32.totalorder (!%p1111_p8), %s1771_s17, 0 }
  0x7d   : > { %190 = sbr.rel (%p1111_p8) target bundleno = 290 (0x122), region = 44 }
  0x84   : > { %194 = sbr.rel (%p1112_p9) target bundleno = 150 (0x96), region = 48  ;;  %s195_s15 = sld [smem:[#allocation6 + %s1768_s16]] (!%p1112_p9) }
  0x85   : > { %s196_s23 = sld [smem:[#allocation7 + %s1768_s16]] (!%p1112_p9) }
  0x8a   : > { %s197_s24 = sshra.s32 (!%p1112_p9), %s195_s15, 3  ;;  %s200_s18 = sand.u32 (!%p1112_p9), 7, %s195_s15 }
  0x8b   : > { %s1226_s19 = sshll.u32 %s197_s24, 4  ;;  %s206_s21 = sshra.s32 %s196_s23, 3 }
  0x8c   : > { %s203_s13 = sadd.s32 %s1226_s19, %s200_s18  ;;  %s209_s22 = sand.u32 7, %s196_s23 }
  0x8d   : > { %s1227_s25 = sshll.u32 %s206_s21, 4  ;;  %s204_s26 = scalar_lea.vmem [#allocation13], %s203_s13 }
  0x8e   : > { %v205_v1 = vld [vmem:[%s204_s26] ss:$8 sm:$0x3]  ;;  %s212_s27 = sadd.s32 %s1227_s25, %s209_s22 }
  0x8f   : > { %215 = vst [vmem:[#allocation2] sm:$0x1] %v205_v1  ;;  %v218_v2 = vrot.slane %v205_v1, 1  ;;  %s213_s28 = scalar_lea.vmem [#allocation13], %s212_s27 }
  0x90   : > { %v214_v3 = vld [vmem:[%s213_s28] ss:$8 sm:$0x3] }
  0x91   : > { %216 = vst [vmem:[#allocation2 + $0x8] sm:$0x1] %v214_v3  ;;  %v221_v4 = vrot.slane %v214_v3, 1 }
  0x93   : > { %v223_v5 = vadd.f32 %v221_v4, %v218_v2 }
  0x95   : > { %224 = vst [vmem:[#allocation3] sm:$0x1] %v223_v5 }
  0x96 PF: > { %p1117_p0 = scmp.le.s32.totalorder %s1771_s17, 1 }
  0x97   : > { %s229_s29 = sadd.s32 (!%p1117_p0), 1, %s1768_s16 }
  0x98   : > { %228 = sbr.rel (%p1117_p0) target bundleno = 170 (0xaa), region = 52  ;;  %s230_s30 = sld [smem:[#allocation6 + %s229_s29]] (!%p1117_p0) }
  0x99   : > { %s231_s6 = sld [smem:[#allocation7 + %s229_s29]] (!%p1117_p0) }
  0x9e   : > { %s232_s7 = sshra.s32 (!%p1117_p0), %s230_s30, 3  ;;  %s235_s8 = sand.u32 (!%p1117_p0), 7, %s230_s30 }
  0x9f   : > { %s1228_s9 = sshll.u32 %s232_s7, 4  ;;  %s241_s0 = sshra.s32 %s231_s6, 3 }
  0xa0   : > { %s238_s1 = sadd.s32 %s1228_s9, %s235_s8  ;;  %s244_s15 = sand.u32 7, %s231_s6 }
  0xa1   : > { %s1229_s23 = sshll.u32 %s241_s0, 4  ;;  %s239_s24 = scalar_lea.vmem [#allocation13], %s238_s1 }
  0xa2   : > { %v240_v6 = vld [vmem:[%s239_s24] ss:$8 sm:$0x3]  ;;  %s247_s18 = sadd.s32 %s1229_s23, %s244_s15 }
  0xa3   : > { %250 = vst [vmem:[#allocation2 + $0x1] sm:$0x1] %v240_v6  ;;  %v253_v7 = vrot.slane %v240_v6, 1  ;;  %s248_s19 = scalar_lea.vmem [#allocation13], %s247_s18 }
  0xa4   : > { %v249_v8 = vld [vmem:[%s248_s19] ss:$8 sm:$0x3] }
  0xa5   : > { %251 = vst [vmem:[#allocation2 + $0x9] sm:$0x1] %v249_v8  ;;  %v256_v9 = vrot.slane %v249_v8, 1 }
  0xa7   : > { %v258_v10 = vadd.f32 %v256_v9, %v253_v7 }
  0xa9   : > { %259 = vst [vmem:[#allocation3 + $0x1] sm:$0x1] %v258_v10 }
  0xaa PF: > { %p1122_p3 = scmp.le.s32.totalorder %s1771_s17, 2 }
  0xab   : > { %s264_s21 = sadd.s32 (!%p1122_p3), 2, %s1768_s16 }
  0xac   : > { %263 = sbr.rel (%p1122_p3) target bundleno = 190 (0xbe), region = 56  ;;  %s265_s13 = sld [smem:[#allocation6 + %s264_s21]] (!%p1122_p3) }
  0xad   : > { %s266_s22 = sld [smem:[#allocation7 + %s264_s21]] (!%p1122_p3) }
  0xb2   : > { %s267_s25 = sshra.s32 (!%p1122_p3), %s265_s13, 3  ;;  %s270_s26 = sand.u32 (!%p1122_p3), 7, %s265_s13 }
  0xb3   : > { %s1230_s27 = sshll.u32 %s267_s25, 4  ;;  %s276_s28 = sshra.s32 %s266_s22, 3 }
  0xb4   : > { %s273_s29 = sadd.s32 %s1230_s27, %s270_s26  ;;  %s279_s30 = sand.u32 7, %s266_s22 }
  0xb5   : > { %s1231_s6 = sshll.u32 %s276_s28, 4  ;;  %s274_s7 = scalar_lea.vmem [#allocation13], %s273_s29 }
  0xb6   : > { %v275_v11 = vld [vmem:[%s274_s7] ss:$8 sm:$0x3]  ;;  %s282_s8 = sadd.s32 %s1231_s6, %s279_s30 }
  0xb7   : > { %285 = vst [vmem:[#allocation2 + $0x2] sm:$0x1] %v275_v11  ;;  %v288_v12 = vrot.slane %v275_v11, 1  ;;  %s283_s9 = scalar_lea.vmem [#allocation13], %s282_s8 }
  0xb8   : > { %v284_v13 = vld [vmem:[%s283_s9] ss:$8 sm:$0x3] }
  0xb9   : > { %286 = vst [vmem:[#allocation2 + $0xa] sm:$0x1] %v284_v13  ;;  %v291_v14 = vrot.slane %v284_v13, 1 }
  0xbb   : > { %v293_v15 = vadd.f32 %v291_v14, %v288_v12 }
  0xbd   : > { %294 = vst [vmem:[#allocation3 + $0x2] sm:$0x1] %v293_v15 }
  0xbe PF: > { %p1127_p4 = scmp.le.s32.totalorder %s1771_s17, 3 }
  0xbf   : > { %s299_s0 = sadd.s32 (!%p1127_p4), 3, %s1768_s16 }
  0xc0   : > { %298 = sbr.rel (%p1127_p4) target bundleno = 210 (0xd2), region = 60  ;;  %s300_s1 = sld [smem:[#allocation6 + %s299_s0]] (!%p1127_p4) }
  0xc1   : > { %s301_s15 = sld [smem:[#allocation7 + %s299_s0]] (!%p1127_p4) }
  0xc6   : > { %s302_s23 = sshra.s32 (!%p1127_p4), %s300_s1, 3  ;;  %s305_s24 = sand.u32 (!%p1127_p4), 7, %s300_s1 }
  0xc7   : > { %s1232_s18 = sshll.u32 %s302_s23, 4  ;;  %s311_s19 = sshra.s32 %s301_s15, 3 }
  0xc8   : > { %s308_s21 = sadd.s32 %s1232_s18, %s305_s24  ;;  %s314_s13 = sand.u32 7, %s301_s15 }
  0xc9   : > { %s1233_s22 = sshll.u32 %s311_s19, 4  ;;  %s309_s25 = scalar_lea.vmem [#allocation13], %s308_s21 }
  0xca   : > { %v310_v16 = vld [vmem:[%s309_s25] ss:$8 sm:$0x3]  ;;  %s317_s26 = sadd.s32 %s1233_s22, %s314_s13 }
  0xcb   : > { %320 = vst [vmem:[#allocation2 + $0x3] sm:$0x1] %v310_v16  ;;  %v323_v17 = vrot.slane %v310_v16, 1  ;;  %s318_s27 = scalar_lea.vmem [#allocation13], %s317_s26 }
  0xcc   : > { %v319_v18 = vld [vmem:[%s318_s27] ss:$8 sm:$0x3] }
  0xcd   : > { %321 = vst [vmem:[#allocation2 + $0xb] sm:$0x1] %v319_v18  ;;  %v326_v19 = vrot.slane %v319_v18, 1 }
  0xcf   : > { %v328_v20 = vadd.f32 %v326_v19, %v323_v17 }
  0xd1   : > { %329 = vst [vmem:[#allocation3 + $0x3] sm:$0x1] %v328_v20 }
  0xd2 PF: > { %p1132_p7 = scmp.le.s32.totalorder %s1771_s17, 4 }
  0xd3   : > { %s334_s28 = sadd.s32 (!%p1132_p7), 4, %s1768_s16 }
  0xd4   : > { %333 = sbr.rel (%p1132_p7) target bundleno = 230 (0xe6), region = 64  ;;  %s335_s29 = sld [smem:[#allocation6 + %s334_s28]] (!%p1132_p7) }
  0xd5   : > { %s336_s30 = sld [smem:[#allocation7 + %s334_s28]] (!%p1132_p7) }
  0xda   : > { %s337_s6 = sshra.s32 (!%p1132_p7), %s335_s29, 3  ;;  %s340_s7 = sand.u32 (!%p1132_p7), 7, %s335_s29 }
  0xdb   : > { %s1234_s8 = sshll.u32 %s337_s6, 4  ;;  %s346_s9 = sshra.s32 %s336_s30, 3 }
  0xdc   : > { %s343_s0 = sadd.s32 %s1234_s8, %s340_s7  ;;  %s349_s1 = sand.u32 7, %s336_s30 }
  0xdd   : > { %s1235_s15 = sshll.u32 %s346_s9, 4  ;;  %s344_s23 = scalar_lea.vmem [#allocation13], %s343_s0 }
  0xde   : > { %v345_v21 = vld [vmem:[%s344_s23] ss:$8 sm:$0x3]  ;;  %s352_s24 = sadd.s32 %s1235_s15, %s349_s1 }
  0xdf   : > { %355 = vst [vmem:[#allocation2 + $0x4] sm:$0x1] %v345_v21  ;;  %v358_v22 = vrot.slane %v345_v21, 1  ;;  %s353_s18 = scalar_lea.vmem [#allocation13], %s352_s24 }
  0xe0   : > { %v354_v23 = vld [vmem:[%s353_s18] ss:$8 sm:$0x3] }
  0xe1   : > { %356 = vst [vmem:[#allocation2 + $0xc] sm:$0x1] %v354_v23  ;;  %v361_v24 = vrot.slane %v354_v23, 1 }
  0xe3   : > { %v363_v25 = vadd.f32 %v361_v24, %v358_v22 }
  0xe5   : > { %364 = vst [vmem:[#allocation3 + $0x4] sm:$0x1] %v363_v25 }
  0xe6 PF: > { %p1137_p11 = scmp.le.s32.totalorder %s1771_s17, 5 }
  0xe7   : > { %s369_s19 = sadd.s32 (!%p1137_p11), 5, %s1768_s16 }
  0xe8   : > { %368 = sbr.rel (%p1137_p11) target bundleno = 250 (0xfa), region = 68  ;;  %s370_s21 = sld [smem:[#allocation6 + %s369_s19]] (!%p1137_p11) }
  0xe9   : > { %s371_s13 = sld [smem:[#allocation7 + %s369_s19]] (!%p1137_p11) }
  0xee   : > { %s372_s22 = sshra.s32 (!%p1137_p11), %s370_s21, 3  ;;  %s375_s25 = sand.u32 (!%p1137_p11), 7, %s370_s21 }
  0xef   : > { %s1236_s26 = sshll.u32 %s372_s22, 4  ;;  %s381_s27 = sshra.s32 %s371_s13, 3 }
  0xf0   : > { %s378_s28 = sadd.s32 %s1236_s26, %s375_s25  ;;  %s384_s29 = sand.u32 7, %s371_s13 }
  0xf1   : > { %s1237_s30 = sshll.u32 %s381_s27, 4  ;;  %s379_s6 = scalar_lea.vmem [#allocation13], %s378_s28 }
  0xf2   : > { %v380_v26 = vld [vmem:[%s379_s6] ss:$8 sm:$0x3]  ;;  %s387_s7 = sadd.s32 %s1237_s30, %s384_s29 }
  0xf3   : > { %390 = vst [vmem:[#allocation2 + $0x5] sm:$0x1] %v380_v26  ;;  %v393_v27 = vrot.slane %v380_v26, 1  ;;  %s388_s8 = scalar_lea.vmem [#allocation13], %s387_s7 }
  0xf4   : > { %v389_v28 = vld [vmem:[%s388_s8] ss:$8 sm:$0x3] }
  0xf5   : > { %391 = vst [vmem:[#allocation2 + $0xd] sm:$0x1] %v389_v28  ;;  %v396_v29 = vrot.slane %v389_v28, 1 }
  0xf7   : > { %v398_v30 = vadd.f32 %v396_v29, %v393_v27 }
  0xf9   : > { %399 = vst [vmem:[#allocation3 + $0x5] sm:$0x1] %v398_v30 }
  0xfa PF: > { %p1142_p13 = scmp.le.s32.totalorder %s1771_s17, 6 }
  0xfb   : > { %s404_s9 = sadd.s32 (!%p1142_p13), 6, %s1768_s16 }
  0xfc   : > { %403 = sbr.rel (%p1142_p13) target bundleno = 270 (0x10e), region = 72  ;;  %s405_s0 = sld [smem:[#allocation6 + %s404_s9]] (!%p1142_p13) }
  0xfd   : > { %s406_s1 = sld [smem:[#allocation7 + %s404_s9]] (!%p1142_p13) }
 0x102   : > { %s407_s15 = sshra.s32 (!%p1142_p13), %s405_s0, 3  ;;  %s410_s23 = sand.u32 (!%p1142_p13), 7, %s405_s0 }
 0x103   : > { %s1238_s24 = sshll.u32 %s407_s15, 4  ;;  %s416_s18 = sshra.s32 %s406_s1, 3 }
 0x104   : > { %s413_s19 = sadd.s32 %s1238_s24, %s410_s23  ;;  %s419_s21 = sand.u32 7, %s406_s1 }
 0x105   : > { %s1239_s13 = sshll.u32 %s416_s18, 4  ;;  %s414_s22 = scalar_lea.vmem [#allocation13], %s413_s19 }
 0x106   : > { %v415_v31 = vld [vmem:[%s414_s22] ss:$8 sm:$0x3]  ;;  %s422_s25 = sadd.s32 %s1239_s13, %s419_s21 }
 0x107   : > { %425 = vst [vmem:[#allocation2 + $0x6] sm:$0x1] %v415_v31  ;;  %v428_v32 = vrot.slane %v415_v31, 1  ;;  %s423_s26 = scalar_lea.vmem [#allocation13], %s422_s25 }
 0x108   : > { %v424_v33 = vld [vmem:[%s423_s26] ss:$8 sm:$0x3] }
 0x109   : > { %426 = vst [vmem:[#allocation2 + $0xe] sm:$0x1] %v424_v33  ;;  %v431_v34 = vrot.slane %v424_v33, 1 }
 0x10b   : > { %v433_v35 = vadd.f32 %v431_v34, %v428_v32 }
 0x10d   : > { %434 = vst [vmem:[#allocation3 + $0x6] sm:$0x1] %v433_v35 }
 0x10e PF: > { %p1147_p1 = scmp.le.s32.totalorder %s1771_s17, 7 }
 0x10f   : > { %s439_s27 = sadd.s32 (!%p1147_p1), 7, %s1768_s16 }
 0x110   : > { %438 = sbr.rel (%p1147_p1) target bundleno = 290 (0x122), region = 76  ;;  %s440_s28 = sld [smem:[#allocation6 + %s439_s27]] (!%p1147_p1) }
 0x111   : > { %s441_s29 = sld [smem:[#allocation7 + %s439_s27]] (!%p1147_p1) }
 0x116   : > { %s442_s30 = sshra.s32 (!%p1147_p1), %s440_s28, 3  ;;  %s445_s6 = sand.u32 (!%p1147_p1), 7, %s440_s28 }
 0x117   : > { %s1240_s7 = sshll.u32 %s442_s30, 4  ;;  %s451_s8 = sshra.s32 %s441_s29, 3 }
 0x118   : > { %s448_s9 = sadd.s32 %s1240_s7, %s445_s6  ;;  %s454_s0 = sand.u32 7, %s441_s29 }
 0x119   : > { %s1241_s1 = sshll.u32 %s451_s8, 4  ;;  %s449_s15 = scalar_lea.vmem [#allocation13], %s448_s9 }
 0x11a   : > { %v450_v36 = vld [vmem:[%s449_s15] ss:$8 sm:$0x3]  ;;  %s457_s23 = sadd.s32 %s1241_s1, %s454_s0 }
 0x11b   : > { %460 = vst [vmem:[#allocation2 + $0x7] sm:$0x1] %v450_v36  ;;  %v463_v37 = vrot.slane %v450_v36, 1  ;;  %s458_s24 = scalar_lea.vmem [#allocation13], %s457_s23 }
 0x11c   : > { %v459_v38 = vld [vmem:[%s458_s24] ss:$8 sm:$0x3] }
 0x11d   : > { %461 = vst [vmem:[#allocation2 + $0xf] sm:$0x1] %v459_v38  ;;  %v466_v39 = vrot.slane %v459_v38, 1 }
 0x11f   : > { %v468_v40 = vadd.f32 %v466_v39, %v463_v37 }
 0x121   : > { %469 = vst [vmem:[#allocation3 + $0x7] sm:$0x1] %v468_v40 }
 0x122 PF: > { %v1308_v41 = vld [vmem:[#allocation11 + $0x4] ss:$16 sps:$4 sm:$0xff]   ;;  %v1310_v42 = vld [vmem:[#allocation11] ss:$16 sps:$4 sm:$0xff]   ;;  %v1319_v46 = vld [vmem:[#allocation11 + $0xc] ss:$16 sps:$4 sm:$0xff]  }
 0x123   : > { %862 = vmatprep.subr.bf16.mxu0 %v1308_v41  ;;  %v1311_v43 = vld [vmem:[#allocation11 + $0x24] ss:$16 sps:$4 sm:$0xff]   ;;  %v1313_v44 = vld [vmem:[#allocation11 + $0x20] ss:$16 sps:$4 sm:$0xff]   ;;  %v1322_v47 = vld [vmem:[#allocation11 + $0x8] ss:$16 sps:$4 sm:$0xff]   ;;  %903 = vmatprep.subr.bf16.mxu1 %v1319_v46 }
 0x124   : > { %863 = vmatpush1.bf16.msra.mxu0 %v1310_v42  ;;  %v1314_v45 = vld [vmem:[#allocation11 + $0x44] ss:$16 sps:$4 sm:$0xff]   ;;  %v1316_v48 = vld [vmem:[#allocation11 + $0x40] ss:$16 sps:$4 sm:$0xff]   ;;  %904 = vmatpush1.bf16.msra.mxu1 %v1322_v47  ;;  %v1325_v50 = vld [vmem:[#allocation11 + $0x2c] ss:$16 sps:$4 sm:$0xff]  }
 0x125   : > { %864 = vmatprep.subr.bf16.mxu0 %v1311_v43  ;;  %v1317_v49 = vld [vmem:[#allocation11 + $0x64] ss:$16 sps:$4 sm:$0xff]   ;;  %v1328_v51 = vld [vmem:[#allocation11 + $0x28] ss:$16 sps:$4 sm:$0xff]   ;;  %905 = vmatprep.subr.bf16.mxu1 %v1325_v50  ;;  %v1321_v52 = vld [vmem:[#allocation11 + $0x60] ss:$16 sps:$4 sm:$0xff]  }
 0x126   : > { %v1323_v53 = vld [vmem:[#allocation11 + $0x84] ss:$16 sps:$4 sm:$0xff]   ;;  %v1331_v54 = vld [vmem:[#allocation11 + $0x4c] ss:$16 sps:$4 sm:$0xff]   ;;  %v1334_v55 = vld [vmem:[#allocation11 + $0x48] ss:$16 sps:$4 sm:$0xff]  }
 0x127   : > { %v1337_v56 = vld [vmem:[#allocation11 + $0x6c] ss:$16 sps:$4 sm:$0xff]   ;;  %v1327_v57 = vld [vmem:[#allocation11 + $0x80] ss:$16 sps:$4 sm:$0xff]   ;;  %v1329_v58 = vld [vmem:[#allocation11 + $0xa4] ss:$16 sps:$4 sm:$0xff]  }
 0x128   : > { %865 = vmatpush1.bf16.msra.mxu0 %v1313_v44  ;;  %906 = vmatpush1.bf16.msra.mxu1 %v1328_v51  ;;  %v1340_v59 = vld [vmem:[#allocation11 + $0x68] ss:$16 sps:$4 sm:$0xff]   ;;  %v1343_v60 = vld [vmem:[#allocation11 + $0x8c] ss:$16 sps:$4 sm:$0xff]   ;;  %v1333_v61 = vld [vmem:[#allocation11 + $0xa0] ss:$16 sps:$4 sm:$0xff]  }
 0x129   : > { %866 = vmatprep.subr.bf16.mxu0 %v1314_v45  ;;  %907 = vmatprep.subr.bf16.mxu1 %v1331_v54  ;;  %v1335_v62 = vld [vmem:[#allocation11 + $0xc4] ss:$16 sps:$4 sm:$0xff]   ;;  %v1346_v63 = vld [vmem:[#allocation11 + $0x88] ss:$16 sps:$4 sm:$0xff]   ;;  %v1349_v0 = vld [vmem:[#allocation11 + $0xac] ss:$16 sps:$4 sm:$0xff]  }
 0x12a   : > { %v1339_v1 = vld [vmem:[#allocation11 + $0xc0] ss:$16 sps:$4 sm:$0xff]   ;;  %v1341_v2 = vld [vmem:[#allocation11 + $0xe4] ss:$16 sps:$4 sm:$0xff]   ;;  %v1352_v3 = vld [vmem:[#allocation11 + $0xa8] ss:$16 sps:$4 sm:$0xff]  }
 0x12b   : > { %v1355_v4 = vld [vmem:[#allocation11 + $0xcc] ss:$16 sps:$4 sm:$0xff]   ;;  %v1345_v5 = vld [vmem:[#allocation11 + $0xe0] ss:$16 sps:$4 sm:$0xff]   ;;  %v1347_v6 = vld [vmem:[#allocation11 + $0x104] ss:$16 sps:$4 sm:$0xff]  }
 0x12c   : > { %867 = vmatpush1.bf16.msra.mxu0 %v1316_v48  ;;  %908 = vmatpush1.bf16.msra.mxu1 %v1334_v55  ;;  %v1358_v7 = vld [vmem:[#allocation11 + $0xc8] ss:$16 sps:$4 sm:$0xff]   ;;  %v1361_v8 = vld [vmem:[#allocation11 + $0xec] ss:$16 sps:$4 sm:$0xff]   ;;  %v1351_v9 = vld [vmem:[#allocation11 + $0x100] ss:$16 sps:$4 sm:$0xff]  }
 0x12d   : > { %868 = vmatprep.subr.bf16.mxu0 %v1317_v49  ;;  %909 = vmatprep.subr.bf16.mxu1 %v1337_v56  ;;  %v1353_v10 = vld [vmem:[#allocation11 + $0x124] ss:$16 sps:$4 sm:$0xff]   ;;  %v1364_v11 = vld [vmem:[#allocation11 + $0xe8] ss:$16 sps:$4 sm:$0xff]   ;;  %v1367_v12 = vld [vmem:[#allocation11 + $0x10c] ss:$16 sps:$4 sm:$0xff]  }
 0x12e   : > { %v1357_v13 = vld [vmem:[#allocation11 + $0x120] ss:$16 sps:$4 sm:$0xff]   ;;  %v1359_v14 = vld [vmem:[#allocation11 + $0x144] ss:$16 sps:$4 sm:$0xff]   ;;  %v1370_v15 = vld [vmem:[#allocation11 + $0x108] ss:$16 sps:$4 sm:$0xff]  }
 0x12f   : > { %v1373_v16 = vld [vmem:[#allocation11 + $0x12c] ss:$16 sps:$4 sm:$0xff]   ;;  %v475_v17 = vld [vmem:[#allocation2 + $0x8] sm:$0xff]  ;;  %v1376_v21 = vld [vmem:[#allocation11 + $0x128] ss:$16 sps:$4 sm:$0xff]   ;;  %s973_s17 = sshra.s32 %s1768_s16, 3 }
 0x130   : > { %869 = vmatpush1.bf16.msra.mxu0 %v1321_v52  ;;  %910 = vmatpush1.bf16.msra.mxu1 %v1340_v59  ;;  %v1363_v18 = vld [vmem:[#allocation11 + $0x140] ss:$16 sps:$4 sm:$0xff]   ;;  %v477_v19 = vpack.c.bf16 %v475_v17, %v475_v17  ;;  %v1365_v20 = vld [vmem:[#allocation11 + $0x164] ss:$16 sps:$4 sm:$0xff]   ;;  %v1379_v22 = vld [vmem:[#allocation11 + $0x14c] ss:$16 sps:$4 sm:$0xff]  }
 0x131   : > { %870 = vmatprep.subr.bf16.mxu0 %v1323_v53  ;;  %911 = vmatprep.subr.bf16.mxu1 %v1343_v60  ;;  %v1369_v23 = vld [vmem:[#allocation11 + $0x160] ss:$16 sps:$4 sm:$0xff]   ;;  %v1371_v24 = vld [vmem:[#allocation11 + $0x184] ss:$16 sps:$4 sm:$0xff]   ;;  %v1382_v25 = vld [vmem:[#allocation11 + $0x148] ss:$16 sps:$4 sm:$0xff]  }
 0x132   : > { %894 = vmatprep.mubr.bf16.mxu0 %v477_v19  ;;  %935 = vmatprep.mubr.bf16.mxu1 %v477_v19  ;;  %v1385_v26 = vld [vmem:[#allocation11 + $0x16c] ss:$16 sps:$4 sm:$0xff]   ;;  %v1375_v27 = vld [vmem:[#allocation11 + $0x180] ss:$16 sps:$4 sm:$0xff]   ;;  %v1377_v28 = vld [vmem:[#allocation11 + $0x1a4] ss:$16 sps:$4 sm:$0xff]  }
 0x133   : > { %v1388_v29 = vld [vmem:[#allocation11 + $0x168] ss:$16 sps:$4 sm:$0xff]   ;;  %v1391_v30 = vld [vmem:[#allocation11 + $0x18c] ss:$16 sps:$4 sm:$0xff]   ;;  %v1381_v31 = vld [vmem:[#allocation11 + $0x1a0] ss:$16 sps:$4 sm:$0xff]  }
 0x134   : > { %871 = vmatpush1.bf16.msra.mxu0 %v1327_v57  ;;  %912 = vmatpush1.bf16.msra.mxu1 %v1346_v63  ;;  %v1383_v32 = vld [vmem:[#allocation11 + $0x1c4] ss:$16 sps:$4 sm:$0xff]   ;;  %v1394_v33 = vld [vmem:[#allocation11 + $0x188] ss:$16 sps:$4 sm:$0xff]   ;;  %v1395_v34 = vld [vmem:[#allocation11 + $0x1ac] ss:$16 sps:$4 sm:$0xff]  }
 0x135   : > { %872 = vmatprep.subr.bf16.mxu0 %v1329_v58  ;;  %913 = vmatprep.subr.bf16.mxu1 %v1349_v0  ;;  %v1387_v35 = vld [vmem:[#allocation11 + $0x1c0] ss:$16 sps:$4 sm:$0xff]   ;;  %v1389_v36 = vld [vmem:[#allocation11 + $0x1e4] ss:$16 sps:$4 sm:$0xff]   ;;  %v1397_v37 = vld [vmem:[#allocation11 + $0x1a8] ss:$16 sps:$4 sm:$0xff]  }
 0x136   : > { %v1398_v38 = vld [vmem:[#allocation11 + $0x1cc] ss:$16 sps:$4 sm:$0xff]   ;;  %v1393_v39 = vld [vmem:[#allocation11 + $0x1e0] ss:$16 sps:$4 sm:$0xff]   ;;  %v1400_v41 = vld [vmem:[#allocation11 + $0x1c8] ss:$16 sps:$4 sm:$0xff]  }
 0x137   : > { %v474_v40 = vld [vmem:[#allocation2] sm:$0xff]  ;;  %v470_v45 = vld [vmem:[%s1757_s2] sm:$0xff]  ;;  %v472_v55 = vld [vmem:[%s1757_s2 + $0x10] sm:$0xff]  ;;  %s1242_s18 = sshll.u32 %s973_s17, 4  ;;  %s1592_s19 = smov [#allocation13]  }
 0x138   : > { %873 = vmatpush1.bf16.msra.mxu0 %v1333_v61  ;;  %914 = vmatpush1.bf16.msra.mxu1 %v1352_v3  ;;  %v1401_v42 = vld [vmem:[#allocation11 + $0x1ec] ss:$16 sps:$4 sm:$0xff]   ;;  %v476_v43 = vpack.c.bf16 %v474_v40, %v474_v40  ;;  %v1403_v44 = vld [vmem:[#allocation11 + $0x1e8] ss:$16 sps:$4 sm:$0xff]   ;;  %s986_s21 = sshll.u32 %s1592_s19, 4  ;;  %p1264_p12 = scmp.eq.s32.totalorder %s1662_s14, 3  ;;  %s987_s21 = int_to_ptr.vmem [resolvable:$true] %s986_s21 }
 0x139   : > { %874 = vmatprep.subr.bf16.mxu0 %v1335_v62  ;;  %915 = vmatprep.subr.bf16.mxu1 %v1355_v4  ;;  %v471_v46 = vld [vmem:[%s1757_s2 + $0x8] sm:$0xff]  ;;  %v473_v61 = vld [vmem:[%s1757_s2 + $0x18] sm:$0xff]  ;;  %s977_s2 = scalar_lea.vmem [#allocation13], %s1242_s18  ;;  %s1512_s16 = scalar_lea.vmem %s987_s21, 1024 }
 0x13a   : > { %p1513_p10 = scmp.ne.s32.totalorder %s987_s21, %s1512_s16  ;;  %p1519_p6 = scmp.lt.s32.totalorder %s987_s21, %s987_s21 }
 0x13b   : > { %p1520_p8 = scmp.lt.s32.totalorder %s1512_s16, %s1512_s16 }
 0x13c   : > { %875 = vmatpush1.bf16.msra.mxu0 %v1339_v1  ;;  %916 = vmatpush1.bf16.msra.mxu1 %v1358_v7  ;;  %p1514_p2 = pnand %p1513_p10, %p1264_p12 }
 0x13d   : > { %876 = vmatprep.subr.bf16.mxu0 %v1341_v2  ;;  %917 = vmatprep.subr.bf16.mxu1 %v1361_v8  ;;  %p1521_p9 = por %p1520_p8, %p1519_p6 }
 0x13e   : > { %p1515_p5 = pneg %p1514_p2 }
 0x140   : > { %877 = vmatpush1.bf16.msra.mxu0 %v1345_v5  ;;  %918 = vmatpush1.bf16.msra.mxu1 %v1364_v11  ;;  %p1522_p0 = pnand %p1521_p9, %p1515_p5 }
 0x141   : > { %878 = vmatprep.subr.bf16.mxu0 %v1347_v6  ;;  %919 = vmatprep.subr.bf16.mxu1 %v1367_v12  ;;  %v968_v6 = vld [vmem:[#allocation3] sm:$0xff] }
 0x144   : > { %879 = vmatpush1.bf16.msra.mxu0 %v1351_v9  ;;  %920 = vmatpush1.bf16.msra.mxu1 %v1370_v15 }
 0x145   : > { %880 = vmatprep.subr.bf16.mxu0 %v1353_v10  ;;  %921 = vmatprep.subr.bf16.mxu1 %v1373_v16 }
 0x148   : > { %881 = vmatpush1.bf16.msra.mxu0 %v1357_v13  ;;  %922 = vmatpush1.bf16.msra.mxu1 %v1376_v21 }
 0x149   : > { %882 = vmatprep.subr.bf16.mxu0 %v1359_v14  ;;  %923 = vmatprep.subr.bf16.mxu1 %v1379_v22 }
 0x14c   : > { %883 = vmatpush1.bf16.msra.mxu0 %v1363_v18  ;;  %924 = vmatpush1.bf16.msra.mxu1 %v1382_v25 }
 0x14d   : > { %884 = vmatprep.subr.bf16.mxu0 %v1365_v20  ;;  %925 = vmatprep.subr.bf16.mxu1 %v1385_v26 }
 0x150   : > { %885 = vmatpush1.bf16.msra.mxu0 %v1369_v23  ;;  %926 = vmatpush1.bf16.msra.mxu1 %v1388_v29 }
 0x151   : > { %886 = vmatprep.subr.bf16.mxu0 %v1371_v24  ;;  %927 = vmatprep.subr.bf16.mxu1 %v1391_v30 }
 0x154   : > { %887 = vmatpush1.bf16.msra.mxu0 %v1375_v27  ;;  %928 = vmatpush1.bf16.msra.mxu1 %v1394_v33 }
 0x155   : > { %888 = vmatprep.subr.bf16.mxu0 %v1377_v28  ;;  %929 = vmatprep.subr.bf16.mxu1 %v1395_v34 }
 0x158   : > { %889 = vmatpush1.bf16.msra.mxu0 %v1381_v31  ;;  %930 = vmatpush1.bf16.msra.mxu1 %v1397_v37 }
 0x159   : > { %890 = vmatprep.subr.bf16.mxu0 %v1383_v32  ;;  %931 = vmatprep.subr.bf16.mxu1 %v1398_v38 }
 0x15c   : > { %891 = vmatpush1.bf16.msra.mxu0 %v1387_v35  ;;  %932 = vmatpush1.bf16.msra.mxu1 %v1400_v41 }
 0x15d   : > { %892 = vmatprep.subr.bf16.mxu0 %v1389_v36  ;;  %933 = vmatprep.subr.bf16.mxu1 %v1401_v42 }
 0x160   : > { %893 = vmatpush1.bf16.msra.mxu0 %v1393_v39  ;;  %934 = vmatpush1.bf16.msra.mxu1 %v1403_v44 }
 0x163   : > { %895 = vmatmul.mubr.bf16.vlgmr.msra.gmra.mrb[0].mxu0 %v476_v43  ;;  %936 = vmatmul.mubr.bf16.vlgmr.msra.gmra.mrb[0].mxu1 %v476_v43 }
 0x236   : > { %v896_v47 = vpop.f32.mrb[0].mxu0  ;;  %v937_v56 = vpop.f32.mrb[0].mxu1 }
 0x237   : > { %v944_v48 = vadd.f32 %v896_v47, %v470_v45  ;;  %v898_v49 = vpop.f32.mrb[1].mxu0  ;;  %v939_v57 = vpop.f32.mrb[1].mxu1  ;;  %v946_v58 = vadd.f32 %v937_v56, %v472_v55 }
 0x238   : > { %v945_v50 = vadd.f32 %v898_v49, %v471_v46  ;;  %v900_v51 = vpop.f32.mrb[2].mxu0  ;;  %v941_v59 = vpop.f32.mrb[2].mxu1  ;;  %v947_v63 = vadd.f32 %v939_v57, %v473_v61 }
 0x239   : > { %v1216_v52 = vmul.f32 -1.442695, %v944_v48  ;;  %v901_v53 = vpop.f32.mrb[3].mxu0  ;;  %v942_v60 = vpop.f32.mrb[3].mxu1  ;;  %v1218_v62 = vmul.f32 -1.442695, %v946_v58 }
 0x23a   : > { %v1217_v54 = vmul.f32 -1.442695, %v945_v50 }
 0x23b   : > { %1404 = vpow2.f32 %v1216_v52 }
 0x23c   : > { %1406 = vpow2.f32 %v1217_v54 }
 0x23d   : > { %1408 = vpow2.f32 %v1218_v62 }
 0x23e   : > { %1410 = vtanh.f32 %v947_v63 }
 0x245   : > { %v1405_v0 = vpop.eup %1404 }
 0x246   : > { %v1407_v1 = vpop.eup %1406  ;;  %v951_v2 = vadd.f32 1.0, %v1405_v0 }
 0x247   : > { %v957_v3 = vadd.f32 1.0, %v1407_v1  ;;  %v1409_v4 = vpop.eup %1408 }
 0x248   : > { %1412 = vrcp.f32 %v951_v2  ;;  %v1411_v5 = vpop.eup %1410  ;;  %v963_v8 = vadd.f32 1.0, %v1409_v4 }
 0x249   : > { %1414 = vrcp.f32 %v957_v3 }
 0x24a   : > { %1416 = vrcp.f32 %v963_v8 }
 0x252   : > { %v1413_v7 = vpop.eup %1412 }
 0x253   : > { %v1415_v9 = vpop.eup %1414  ;;  %v967_v10 = vmul.f32 %v1413_v7, %v1411_v5 }
 0x254   : > { %v969_v11 = vmul.f32 %v1415_v9, %v968_v6  ;;  %v1417_v13 = vpop.eup %1416 }
 0x256   : > { %v970_v12 = vadd.f32 %v969_v11, %v967_v10 }
 0x258   : > { %1418 = vtanh.f32 %v970_v12  ;;  %979 = vst [vmem:[%s977_s2 + $0x8] sm:$0xff] %v970_v12 }
 0x262   : > { %v1419_v14 = vpop.eup %1418 }
 0x263   : > { %v972_v15 = vmul.f32 %v1419_v14, %v1417_v13 }
 0x265   : > { %978 = vst [vmem:[%s977_s2] sm:$0xff] %v972_v15 }
 0x266   : > { %1525 = shalt.err (!%p1522_p0)
}
 0x267   : > { %s1526_s25 = scalar_lea.hbm %s1837_s5, 1024 }
 0x268   : > { %p1527_p3 = scmp.ne.s32.totalorder %s1837_s5, %s1526_s25  ;;  %p1532_p11 = scmp.lt.u32.totalorder %s1526_s25, %s1837_s5 }
 0x26a   : > { %p1528_p4 = pnand %p1527_p3, %p1264_p12 }
 0x26c   : > { %p1529_p7 = pneg %p1528_p4 }
 0x26e   : > { %p1534_p13 = pnand %p1532_p11, %p1529_p7 }
 0x270   : > { %1537 = shalt.err (!%p1534_p13)
}
 0x271   : > { %s1593_s30 = smov 256   ;;  %s1594_s6 = smov 16  }
 0x272   : > { %1250 = dma.vmem_to_hbm [thread:$0]  (%p1264_p12), %s987_s21, 1024, %s1837_s5, [#allocation10], %s1593_s30, %s1593_s30, %s1594_s6  }
 0x273   : > { %1565 = dma.done.wait (%p1264_p12), [#allocation10], 1024  }
 0x274   : > { %1567 = vsyncadd (%p1264_p12), [#allocation10], 4294966272 }
 0x275 PF: > { %p29_p1 = scmp.ge.s32.totalorder %s1688_s20, 6   ;;  %s1852_s2 = smov %s1574_s11 }
 0x276   : > { %s1853_s11 = smov %s1578_s12  ;;  %s1854_s12 = smov %s1714_s10 }
 0x277   : > { %s1855_s13 = smov %s1688_s20  ;;  %31 = sbr.rel (!%p29_p1) target bundleno = 38 (0x26), region = 126 }
 0x27e   :  { %1002 = vsyncpa [#allocation9], 1 }
 0x27f   :  { %1004 = vsyncpa [#allocation9 + $0x1], 1 }
 0x280   :  { %1005 = vsyncpa [#allocation12], 1 }
 0x281   :  { %1006 = vsyncpa [#allocation10], 1 }
 0x282   :  { %1008 = vsyncpa [#allocation10 + $0x1], 1 }

</bundles_post_ra>
